<compile_context>
chip_gen: v7x
topology: tpu7x:2x2x1
jax: 0.10.0
libtpu: 0.0.40
codegen_flags: <defaults>
</compile_context>

<pallas_src>
import numpy as np
import jax
import jax.numpy as jnp
from jax.experimental import pallas as pl
from jax.experimental.pallas import tpu as pltpu

NUM_CLASSES = 10
EPS = 1e-5
LANES = 128
MATMUL_DTYPE = jnp.bfloat16   # weight slabs / matmul LHS; set to float32 for tighter accuracy


def _round_up(a, b):
    return (a + b - 1) // b * b


# --------------------------------------------------------------------------
# Offline operand preparation: fold conv weights + BN scale + the W half of
# AvgPool2d(2,2) into 128-lane mixing matrices, fold fc1.fc2.fc3 into one slab.
# --------------------------------------------------------------------------
def build_kernel_operands(p):
    g = {k: np.asarray(v, np.float32) for k, v in p.items()}

    def bn_fold(gamma, beta, mean, var, conv_bias):
        scale = gamma / np.sqrt(var + EPS)
        shift = beta + scale * (conv_bias - mean)
        return scale.astype(np.float32), shift.astype(np.float32)

    def conv_pool_mix_taps(w, W_in, W_out, scale, k_pad):
        # w: (Cout, Cin, 5, 5). Per-H-tap lane-mixing matrices (5, k_pad, 128)
        # mapping input lane [w_in*Cin + c] -> W-pooled, BN-scaled output lane
        # [(w_out//2)*Cout + o]; the 0.5 is the W half of AvgPool2d(2, 2).
        Cout, Cin, K, _ = w.shape
        Wq = W_out // 2
        M = np.zeros((K, k_pad, LANES), np.float32)
        for kh in range(K):
            for kw in range(K):
                for wo in range(W_out):
                    q = wo // 2
                    M[kh, (wo + kw) * Cin:(wo + kw + 1) * Cin,
                      q * Cout:(q + 1) * Cout] += 0.5 * w[:, :, kh, kw].T
        M[:, :, :Wq * Cout] *= np.tile(scale, Wq)[None, None, :]
        return M

    sc1, sh1 = bn_fold(g['bn1_g'], g['bn1_b'], g['bn1_m'], g['bn1_v'], g['conv1_b'])
    sc2, sh2 = bn_fold(g['bn2_g'], g['bn2_b'], g['bn2_m'], g['bn2_v'], g['conv2_b'])

    # conv1: single matmul against the wrapper-built 160-lane im2col slab.
    m1 = conv_pool_mix_taps(g['conv1_w'], 32, 28, sc1, k_pad=32).reshape(5 * 32, LANES)
    # conv2: 5 per-tap (128, 128) slabs (input rows >= 84 and out lanes >= 80 are zero).
    m2 = conv_pool_mix_taps(g['conv2_w'], 14, 10, sc2, k_pad=LANES)

    sh1_t = np.zeros((1, LANES), np.float32); sh1_t[0, :84] = np.tile(sh1, 14)
    sh2_t = np.zeros((1, LANES), np.float32); sh2_t[0, :80] = np.tile(sh2, 5)

    # fc1.fc2.fc3 folded offline (no nonlinearity between them in forward()).
    f64 = np.float64
    wfold = (g['fc1_w'].T.astype(f64) @ g['fc2_w'].T.astype(f64)
             @ g['fc3_w'].T.astype(f64)).astype(np.float32)            # (400, 10)
    bfold = ((g['fc1_b'].astype(f64) @ g['fc2_w'].T.astype(f64)
              + g['fc2_b'].astype(f64)) @ g['fc3_w'].T.astype(f64)
             + g['fc3_b'].astype(f64)).astype(np.float32)               # (10,)

    # Re-index rows from PyTorch flatten order (c*25 + h*5 + w) to the kernel's
    # pooled-row lane order (w*16 + c); one (128, 128) slab per pooled row h.
    wfc = np.zeros((5, LANES, LANES), np.float32)
    for h in range(5):
        for wq in range(5):
            for c in range(16):
                wfc[h, wq * 16 + c, :NUM_CLASSES] = wfold[c * 25 + h * 5 + wq, :]
    bfc = np.zeros((1, LANES), np.float32); bfc[0, :NUM_CLASSES] = bfold

    return dict(
        m1=jnp.asarray(m1, MATMUL_DTYPE), sh1=jnp.asarray(sh1_t),
        m2=jnp.asarray(m2, MATMUL_DTYPE), sh2=jnp.asarray(sh2_t),
        wfc=jnp.asarray(wfc, MATMUL_DTYPE), bfc=jnp.asarray(bfc),
    )


# --------------------------------------------------------------------------
# Pallas kernel wrapper: TB samples per grid step.
# --------------------------------------------------------------------------
def lenet_forward(x_nchw, params, *, tb=128):
    B = x_nchw.shape[0]
    ops = build_kernel_operands(params)

    # Batch tile: multiple of 8, <= tb, and small enough that the grid has at
    # least 2 steps whenever the batch allows it (v7x has 2 TensorCores).
    TB = _round_up(min(tb, max(B, 1)), 8)
    if B > 8:
        TB = min(TB, _round_up(-(-B // 2), 8))
    TB = max(TB, 8)
    Bp = _round_up(B, TB)
    grid = (Bp // TB,)

    R1 = TB * 32   # conv1 rows per block (28 valid + 4 junk rows per sample)
    P1 = TB * 16   # pool1 / conv2 rows per block (14 / 10 valid per sample)

    # NCHW (B,1,32,32) -> batch-row-stacked im2col slab (Bp*32, 160):
    # row = b*32 + r, lane = kh*32 + w  holds  x[b, 0, r + kh, w]  (zero-padded).
    x = x_nchw.astype(jnp.float32).reshape(B, 32, 32)
    if Bp != B:
        x = jnp.concatenate([x, jnp.zeros((Bp - B, 32, 32), jnp.float32)], axis=0)
    xpad = jnp.pad(x, ((0, 0), (0, 4), (0, 0)))
    x1 = jnp.concatenate([xpad[:, kh:kh + 32, :] for kh in range(5)], axis=2)
    x1 = x1.reshape(Bp * 32, 5 * 32).astype(MATMUL_DTYPE)

    def kernel(x_ref, m1_ref, sh1_ref, m2_ref, sh2_ref, wfc_ref, bfc_ref,
               o_ref, c1_ref, r1_ref, c2_ref):
        f32 = jnp.float32

        # ---- conv1 + BN1 scale + W-avg-pool : one (R1,160)@(160,128) matmul ----
        c1_ref[...] = jnp.dot(x_ref[...], m1_ref[...], preferred_element_type=f32)

        # ---- H-avg-pool (stride-2 row pairs) + BN1 shift + ReLU : (P1, 128) ----
        r1 = jnp.maximum(
            0.5 * (c1_ref[pl.ds(0, P1, stride=2), :]
                   + c1_ref[pl.ds(1, P1, stride=2), :]) + sh1_ref[...], 0.0)
        r1_ref[pl.ds(0, P1), :] = r1
        r1_ref[pl.ds(P1, 8), :] = jnp.zeros((8, LANES), f32)   # tap-overrun rows

        # ---- conv2 + BN2 scale + W-avg-pool : 5 accumulating per-tap matmuls ----
        # LHS for tap kh is the kh-row-shifted window of r1; tail overrun reads
        # the zeroed spare rows and only feeds per-sample junk output rows.
        acc2 = jnp.dot(r1.astype(MATMUL_DTYPE), m2_ref[0],
                       preferred_element_type=f32)
        for kh in range(1, 5):
            acc2 += jnp.dot(r1_ref[pl.ds(kh, P1), :].astype(MATMUL_DTYPE),
                            m2_ref[kh], preferred_element_type=f32)
        c2_ref[...] = acc2

        # ---- H-avg-pool + BN2 shift + ReLU + folded fc1.fc2.fc3 head ----
        # Accumulated one pooled row at a time (no flatten/concat temp).
        logits = None
        for h in range(5):
            row = 0.5 * (c2_ref[pl.ds(2 * h, TB, stride=16), :]
                         + c2_ref[pl.ds(2 * h + 1, TB, stride=16), :]) + sh2_ref[...]
            row = jnp.maximum(row, 0.0).astype(MATMUL_DTYPE)
            part = jnp.dot(row, wfc_ref[h], preferred_element_type=f32)
            logits = part if logits is None else logits + part
        o_ref[...] = logits + bfc_ref[...]            # lane-dense (TB, 128) store

    weights = [ops['m1'], ops['sh1'], ops['m2'], ops['sh2'], ops['wfc'], ops['bfc']]
    in_specs = [
        pl.BlockSpec((R1, 5 * 32), lambda i: (i, 0)),          # im2col input block
        pl.BlockSpec(ops['m1'].shape, lambda i: (0, 0)),       # (160, 128)
        pl.BlockSpec(ops['sh1'].shape, lambda i: (0, 0)),      # (1, 128)
        pl.BlockSpec(ops['m2'].shape, lambda i: (0, 0, 0)),    # (5, 128, 128)
        pl.BlockSpec(ops['sh2'].shape, lambda i: (0, 0)),      # (1, 128)
        pl.BlockSpec(ops['wfc'].shape, lambda i: (0, 0, 0)),   # (5, 128, 128)
        pl.BlockSpec(ops['bfc'].shape, lambda i: (0, 0)),      # (1, 128)
    ]

    out = pl.pallas_call(
        kernel,
        out_shape=jax.ShapeDtypeStruct((Bp, LANES), jnp.float32),
        grid=grid,
        in_specs=in_specs,
        out_specs=pl.BlockSpec((TB, LANES), lambda i: (i, 0)),
        scratch_shapes=[pltpu.VMEM((R1, LANES), jnp.float32),       # conv1 + W-pool
                        pltpu.VMEM((P1 + 8, LANES), jnp.float32),   # relu(pool1) + spare
                        pltpu.VMEM((P1, LANES), jnp.float32)],      # conv2 + W-pool
        compiler_params=pltpu.CompilerParams(dimension_semantics=("parallel",)),
    )(x1, *weights)

    return out[:B, :NUM_CLASSES]


# --------------------------------------------------------------------------
# Pure-JAX reference (mirrors the PyTorch forward, NCHW, high precision).
# --------------------------------------------------------------------------
def lenet_reference(x, p):
    prec = jax.lax.Precision.HIGHEST

    def conv(x, w, b):
        y = jax.lax.conv_general_dilated(
            x, w, (1, 1), 'VALID',
            dimension_numbers=('NCHW', 'OIHW', 'NCHW'), precision=prec)
        return y + b[None, :, None, None]

    def bn(x, g, bb, m, v):
        return (g[None, :, None, None] * (x - m[None, :, None, None])
                / jnp.sqrt(v[None, :, None, None] + EPS)
                + bb[None, :, None, None])

    def pool(x):
        B, C, H, W = x.shape
        return x.reshape(B, C, H // 2, 2, W // 2, 2).mean(axis=(3, 5))

    x = conv(x, p['conv1_w'], p['conv1_b'])
    x = bn(x, p['bn1_g'], p['bn1_b'], p['bn1_m'], p['bn1_v'])
    x = pool(x)
    x = jnp.maximum(x, 0.0)
    x = conv(x, p['conv2_w'], p['conv2_b'])
    x = bn(x, p['bn2_g'], p['bn2_b'], p['bn2_m'], p['bn2_v'])
    x = pool(x)
    x = jnp.maximum(x, 0.0)
    b = x.shape[0]
    x = x.reshape(b, -1)
    x = jnp.dot(x, p['fc1_w'].T, precision=prec) + p['fc1_b']
    x = jnp.dot(x, p['fc2_w'].T, precision=prec) + p['fc2_b']
    x = jnp.dot(x, p['fc3_w'].T, precision=prec) + p['fc3_b']
    return x


if __name__ == "__main__":
    key = jax.random.PRNGKey(0)
    keys = jax.random.split(key, 20)
    p = {
        'conv1_w': 0.1 * jax.random.normal(keys[0], (6, 1, 5, 5), jnp.float32),
        'conv1_b': 0.1 * jax.random.normal(keys[1], (6,), jnp.float32),
        'bn1_g': 1.0 + 0.1 * jax.random.normal(keys[2], (6,), jnp.float32),
        'bn1_b': 0.1 * jax.random.normal(keys[3], (6,), jnp.float32),
        'bn1_m': 0.1 * jax.random.normal(keys[4], (6,), jnp.float32),
        'bn1_v': jax.random.uniform(keys[5], (6,), jnp.float32, 0.5, 1.5),
        'conv2_w': 0.1 * jax.random.normal(keys[6], (16, 6, 5, 5), jnp.float32),
        'conv2_b': 0.1 * jax.random.normal(keys[7], (16,), jnp.float32),
        'bn2_g': 1.0 + 0.1 * jax.random.normal(keys[8], (16,), jnp.float32),
        'bn2_b': 0.1 * jax.random.normal(keys[9], (16,), jnp.float32),
        'bn2_m': 0.1 * jax.random.normal(keys[10], (16,), jnp.float32),
        'bn2_v': jax.random.uniform(keys[11], (16,), jnp.float32, 0.5, 1.5),
        'fc1_w': 0.05 * jax.random.normal(keys[12], (120, 400), jnp.float32),
        'fc1_b': 0.1 * jax.random.normal(keys[13], (120,), jnp.float32),
        'fc2_w': 0.05 * jax.random.normal(keys[14], (84, 120), jnp.float32),
        'fc2_b': 0.1 * jax.random.normal(keys[15], (84,), jnp.float32),
        'fc3_w': 0.05 * jax.random.normal(keys[16], (10, 84), jnp.float32),
        'fc3_b': 0.1 * jax.random.normal(keys[17], (10,), jnp.float32),
    }
    # conv1 has in_channels=1 and fc1 expects 16*5*5, so the input must be 1x32x32.
    # Small demo: batch=32 -> TB=16, grid=2 (keeps both v7x TensorCores busy).
    x = jax.random.normal(keys[18], (32, 1, 32, 32), jnp.float32)

    out = jax.block_until_ready(lenet_forward(x, p))
    ref = jax.block_until_ready(lenet_reference(x, p))
    # Kernel matmul operands are bf16 (f32 accumulate); reference is HIGHEST
    # precision f32 -> small expected gap.
    np.testing.assert_allclose(np.asarray(out), np.asarray(ref),
                               rtol=2e-2, atol=2e-2)
    print("KERNEL_OK")
</pallas_src>

<mosaic_0001>
module attributes {stable_mosaic.version = 11 : i64} {
  func.func @kernel(%arg0: i32, %arg1: memref<512x160xbf16, #tpu.memory_space<vmem>>, %arg2: memref<160x128xbf16, #tpu.memory_space<vmem>>, %arg3: memref<1x128xf32, #tpu.memory_space<vmem>>, %arg4: memref<5x128x128xbf16, #tpu.memory_space<vmem>>, %arg5: memref<1x128xf32, #tpu.memory_space<vmem>>, %arg6: memref<5x128x128xbf16, #tpu.memory_space<vmem>>, %arg7: memref<1x128xf32, #tpu.memory_space<vmem>>, %arg8: memref<16x128xf32, #tpu.memory_space<vmem>>, %arg9: memref<512x128xf32, #tpu.memory_space<vmem>>, %arg10: memref<264x128xf32, #tpu.memory_space<vmem>>, %arg11: memref<256x128xf32, #tpu.memory_space<vmem>>) attributes {dimension_semantics = [#tpu.dimension_semantics<parallel>], iteration_bounds = array<i64: 2>, scalar_prefetch = 0 : i64, scratch_operands = 3 : i64, tpu.core_type = #tpu.core_type<tc>, window_params = [{transform_indices = @transform_0, window_bounds = array<i64: 512, 160>}, {pipeline_mode = #tpu.pipeline_mode<synchronous>, transform_indices = @transform_1, window_bounds = array<i64: 160, 128>}, {pipeline_mode = #tpu.pipeline_mode<synchronous>, transform_indices = @transform_2, window_bounds = array<i64: 1, 128>}, {pipeline_mode = #tpu.pipeline_mode<synchronous>, transform_indices = @transform_3, window_bounds = array<i64: 5, 128, 128>}, {pipeline_mode = #tpu.pipeline_mode<synchronous>, transform_indices = @transform_4, window_bounds = array<i64: 1, 128>}, {pipeline_mode = #tpu.pipeline_mode<synchronous>, transform_indices = @transform_5, window_bounds = array<i64: 5, 128, 128>}, {pipeline_mode = #tpu.pipeline_mode<synchronous>, transform_indices = @transform_6, window_bounds = array<i64: 1, 128>}, {transform_indices = @transform_7, window_bounds = array<i64: 16, 128>}]} {
    %c0 = arith.constant 0 : index
    %c0_0 = arith.constant 0 : index
    %0 = vector.load %arg1[%c0, %c0_0] : memref<512x160xbf16, #tpu.memory_space<vmem>>, vector<512x160xbf16>
    %c0_1 = arith.constant 0 : index
    %c0_2 = arith.constant 0 : index
    %1 = vector.load %arg2[%c0_1, %c0_2] : memref<160x128xbf16, #tpu.memory_space<vmem>>, vector<160x128xbf16>
    %cst = arith.constant dense<0.000000e+00> : vector<512x128xf32>
    %2 = tpu.matmul %0, %1, %cst {dimension_numbers = #tpu.dot_dimension_numbers<[1], [0], [0], [1], [0, 0, 1, 1], [], []>} : vector<512x160xbf16>, vector<160x128xbf16>, vector<512x128xf32> -> vector<512x128xf32>
    %c0_3 = arith.constant 0 : index
    %c0_4 = arith.constant 0 : index
    %3 = vector.load %arg9[%c0_3, %c0_4] : memref<512x128xf32, #tpu.memory_space<vmem>>, vector<512x128xf32>
    tpu.vector_store %arg9[%c0_3, %c0_4], %2 {strides = array<i32>} : memref<512x128xf32, #tpu.memory_space<vmem>>, vector<512x128xf32>,
    %c0_5 = arith.constant 0 : index
    %c0_6 = arith.constant 0 : index
    %4 = tpu.strided_load %arg9[%c0_5, %c0_6] {strides = array<i32: 2, 1>} : memref<512x128xf32, #tpu.memory_space<vmem>>, vector<256x128xf32>
    %c1 = arith.constant 1 : index
    %c0_7 = arith.constant 0 : index
    %5 = tpu.strided_load %arg9[%c1, %c0_7] {strides = array<i32: 2, 1>} : memref<512x128xf32, #tpu.memory_space<vmem>>, vector<256x128xf32>
    %6 = arith.addf %4, %5 : vector<256x128xf32>
    %cst_8 = arith.constant 5.000000e-01 : f32
    %7 = vector.broadcast %cst_8 : f32 to vector<256x128xf32>
    %8 = arith.mulf %7, %6 : vector<256x128xf32>
    %c0_9 = arith.constant 0 : index
    %c0_10 = arith.constant 0 : index
    %9 = vector.load %arg3[%c0_9, %c0_10] : memref<1x128xf32, #tpu.memory_space<vmem>>, vector<1x128xf32>
    %10 = vector.broadcast %9 : vector<1x128xf32> to vector<256x128xf32>
    %11 = arith.addf %8, %10 : vector<256x128xf32>
    %cst_11 = arith.constant 0.000000e+00 : f32
    %12 = vector.broadcast %cst_11 : f32 to vector<256x128xf32>
    %13 = arith.maximumf %11, %12 : vector<256x128xf32>
    %c0_12 = arith.constant 0 : index
    %c0_13 = arith.constant 0 : index
    %14 = vector.load %arg10[%c0_12, %c0_13] : memref<264x128xf32, #tpu.memory_space<vmem>>, vector<256x128xf32>
    tpu.vector_store %arg10[%c0_12, %c0_13], %13 {strides = array<i32>} : memref<264x128xf32, #tpu.memory_space<vmem>>, vector<256x128xf32>,
    %cst_14 = arith.constant 0.000000e+00 : f32
    %15 = vector.broadcast %cst_14 : f32 to vector<8x128xf32>
    %c256 = arith.constant 256 : index
    %c0_15 = arith.constant 0 : index
    %16 = vector.load %arg10[%c256, %c0_15] : memref<264x128xf32, #tpu.memory_space<vmem>>, vector<8x128xf32>
    tpu.vector_store %arg10[%c256, %c0_15], %15 {strides = array<i32>} : memref<264x128xf32, #tpu.memory_space<vmem>>, vector<8x128xf32>,
    %17 = arith.truncf %13 : vector<256x128xf32> to vector<256x128xbf16>
    %c0_16 = arith.constant 0 : index
    %c0_17 = arith.constant 0 : index
    %c0_18 = arith.constant 0 : index
    %18 = vector.load %arg4[%c0_16, %c0_17, %c0_18] : memref<5x128x128xbf16, #tpu.memory_space<vmem>>, vector<1x128x128xbf16>
    %19 = vector.shape_cast %18 : vector<1x128x128xbf16> to vector<128x128xbf16>
    %cst_19 = arith.constant dense<0.000000e+00> : vector<256x128xf32>
    %20 = tpu.matmul %17, %19, %cst_19 {dimension_numbers = #tpu.dot_dimension_numbers<[1], [0], [0], [1], [0, 0, 1, 1], [], []>} : vector<256x128xbf16>, vector<128x128xbf16>, vector<256x128xf32> -> vector<256x128xf32>
    %c1_20 = arith.constant 1 : index
    %c0_21 = arith.constant 0 : index
    %21 = vector.load %arg10[%c1_20, %c0_21] : memref<264x128xf32, #tpu.memory_space<vmem>>, vector<256x128xf32>
    %22 = arith.truncf %21 : vector<256x128xf32> to vector<256x128xbf16>
    %c1_22 = arith.constant 1 : index
    %c0_23 = arith.constant 0 : index
    %c0_24 = arith.constant 0 : index
    %23 = vector.load %arg4[%c1_22, %c0_23, %c0_24] : memref<5x128x128xbf16, #tpu.memory_space<vmem>>, vector<1x128x128xbf16>
    %24 = vector.shape_cast %23 : vector<1x128x128xbf16> to vector<128x128xbf16>
    %cst_25 = arith.constant dense<0.000000e+00> : vector<256x128xf32>
    %25 = tpu.matmul %22, %24, %cst_25 {dimension_numbers = #tpu.dot_dimension_numbers<[1], [0], [0], [1], [0, 0, 1, 1], [], []>} : vector<256x128xbf16>, vector<128x128xbf16>, vector<256x128xf32> -> vector<256x128xf32>
    %26 = arith.addf %20, %25 : vector<256x128xf32>
    %c2 = arith.constant 2 : index
    %c0_26 = arith.constant 0 : index
    %27 = vector.load %arg10[%c2, %c0_26] : memref<264x128xf32, #tpu.memory_space<vmem>>, vector<256x128xf32>
    %28 = arith.truncf %27 : vector<256x128xf32> to vector<256x128xbf16>
    %c2_27 = arith.constant 2 : index
    %c0_28 = arith.constant 0 : index
    %c0_29 = arith.constant 0 : index
    %29 = vector.load %arg4[%c2_27, %c0_28, %c0_29] : memref<5x128x128xbf16, #tpu.memory_space<vmem>>, vector<1x128x128xbf16>
    %30 = vector.shape_cast %29 : vector<1x128x128xbf16> to vector<128x128xbf16>
    %cst_30 = arith.constant dense<0.000000e+00> : vector<256x128xf32>
    %31 = tpu.matmul %28, %30, %cst_30 {dimension_numbers = #tpu.dot_dimension_numbers<[1], [0], [0], [1], [0, 0, 1, 1], [], []>} : vector<256x128xbf16>, vector<128x128xbf16>, vector<256x128xf32> -> vector<256x128xf32>
    %32 = arith.addf %26, %31 : vector<256x128xf32>
    %c3 = arith.constant 3 : index
    %c0_31 = arith.constant 0 : index
    %33 = vector.load %arg10[%c3, %c0_31] : memref<264x128xf32, #tpu.memory_space<vmem>>, vector<256x128xf32>
    %34 = arith.truncf %33 : vector<256x128xf32> to vector<256x128xbf16>
    %c3_32 = arith.constant 3 : index
    %c0_33 = arith.constant 0 : index
    %c0_34 = arith.constant 0 : index
    %35 = vector.load %arg4[%c3_32, %c0_33, %c0_34] : memref<5x128x128xbf16, #tpu.memory_space<vmem>>, vector<1x128x128xbf16>
    %36 = vector.shape_cast %35 : vector<1x128x128xbf16> to vector<128x128xbf16>
    %cst_35 = arith.constant dense<0.000000e+00> : vector<256x128xf32>
    %37 = tpu.matmul %34, %36, %cst_35 {dimension_numbers = #tpu.dot_dimension_numbers<[1], [0], [0], [1], [0, 0, 1, 1], [], []>} : vector<256x128xbf16>, vector<128x128xbf16>, vector<256x128xf32> -> vector<256x128xf32>
    %38 = arith.addf %32, %37 : vector<256x128xf32>
    %c4 = arith.constant 4 : index
    %c0_36 = arith.constant 0 : index
    %39 = vector.load %arg10[%c4, %c0_36] : memref<264x128xf32, #tpu.memory_space<vmem>>, vector<256x128xf32>
    %40 = arith.truncf %39 : vector<256x128xf32> to vector<256x128xbf16>
    %c4_37 = arith.constant 4 : index
    %c0_38 = arith.constant 0 : index
    %c0_39 = arith.constant 0 : index
    %41 = vector.load %arg4[%c4_37, %c0_38, %c0_39] : memref<5x128x128xbf16, #tpu.memory_space<vmem>>, vector<1x128x128xbf16>
    %42 = vector.shape_cast %41 : vector<1x128x128xbf16> to vector<128x128xbf16>
    %cst_40 = arith.constant dense<0.000000e+00> : vector<256x128xf32>
    %43 = tpu.matmul %40, %42, %cst_40 {dimension_numbers = #tpu.dot_dimension_numbers<[1], [0], [0], [1], [0, 0, 1, 1], [], []>} : vector<256x128xbf16>, vector<128x128xbf16>, vector<256x128xf32> -> vector<256x128xf32>
    %44 = arith.addf %38, %43 : vector<256x128xf32>
    %c0_41 = arith.constant 0 : index
    %c0_42 = arith.constant 0 : index
    %45 = vector.load %arg11[%c0_41, %c0_42] : memref<256x128xf32, #tpu.memory_space<vmem>>, vector<256x128xf32>
    tpu.vector_store %arg11[%c0_41, %c0_42], %44 {strides = array<i32>} : memref<256x128xf32, #tpu.memory_space<vmem>>, vector<256x128xf32>,
    %c0_43 = arith.constant 0 : index
    %c0_44 = arith.constant 0 : index
    %46 = tpu.strided_load %arg11[%c0_43, %c0_44] {strides = array<i32: 16, 1>} : memref<256x128xf32, #tpu.memory_space<vmem>>, vector<16x128xf32>
    %c1_45 = arith.constant 1 : index
    %c0_46 = arith.constant 0 : index
    %47 = tpu.strided_load %arg11[%c1_45, %c0_46] {strides = array<i32: 16, 1>} : memref<256x128xf32, #tpu.memory_space<vmem>>, vector<16x128xf32>
    %48 = arith.addf %46, %47 : vector<16x128xf32>
    %cst_47 = arith.constant 5.000000e-01 : f32
    %49 = vector.broadcast %cst_47 : f32 to vector<16x128xf32>
    %50 = arith.mulf %49, %48 : vector<16x128xf32>
    %c0_48 = arith.constant 0 : index
    %c0_49 = arith.constant 0 : index
    %51 = vector.load %arg5[%c0_48, %c0_49] : memref<1x128xf32, #tpu.memory_space<vmem>>, vector<1x128xf32>
    %52 = vector.broadcast %51 : vector<1x128xf32> to vector<16x128xf32>
    %53 = arith.addf %50, %52 : vector<16x128xf32>
    %cst_50 = arith.constant 0.000000e+00 : f32
    %54 = vector.broadcast %cst_50 : f32 to vector<16x128xf32>
    %55 = arith.maximumf %53, %54 : vector<16x128xf32>
    %56 = arith.truncf %55 : vector<16x128xf32> to vector<16x128xbf16>
    %c0_51 = arith.constant 0 : index
    %c0_52 = arith.constant 0 : index
    %c0_53 = arith.constant 0 : index
    %57 = vector.load %arg6[%c0_51, %c0_52, %c0_53] : memref<5x128x128xbf16, #tpu.memory_space<vmem>>, vector<1x128x128xbf16>
    %58 = vector.shape_cast %57 : vector<1x128x128xbf16> to vector<128x128xbf16>
    %cst_54 = arith.constant dense<0.000000e+00> : vector<16x128xf32>
    %59 = tpu.matmul %56, %58, %cst_54 {dimension_numbers = #tpu.dot_dimension_numbers<[1], [0], [0], [1], [0, 0, 1, 1], [], []>} : vector<16x128xbf16>, vector<128x128xbf16>, vector<16x128xf32> -> vector<16x128xf32>
    %c2_55 = arith.constant 2 : index
    %c0_56 = arith.constant 0 : index
    %60 = tpu.strided_load %arg11[%c2_55, %c0_56] {strides = array<i32: 16, 1>} : memref<256x128xf32, #tpu.memory_space<vmem>>, vector<16x128xf32>
    %c3_57 = arith.constant 3 : index
    %c0_58 = arith.constant 0 : index
    %61 = tpu.strided_load %arg11[%c3_57, %c0_58] {strides = array<i32: 16, 1>} : memref<256x128xf32, #tpu.memory_space<vmem>>, vector<16x128xf32>
    %62 = arith.addf %60, %61 : vector<16x128xf32>
    %cst_59 = arith.constant 5.000000e-01 : f32
    %63 = vector.broadcast %cst_59 : f32 to vector<16x128xf32>
    %64 = arith.mulf %63, %62 : vector<16x128xf32>
    %c0_60 = arith.constant 0 : index
    %c0_61 = arith.constant 0 : index
    %65 = vector.load %arg5[%c0_60, %c0_61] : memref<1x128xf32, #tpu.memory_space<vmem>>, vector<1x128xf32>
    %66 = vector.broadcast %65 : vector<1x128xf32> to vector<16x128xf32>
    %67 = arith.addf %64, %66 : vector<16x128xf32>
    %cst_62 = arith.constant 0.000000e+00 : f32
    %68 = vector.broadcast %cst_62 : f32 to vector<16x128xf32>
    %69 = arith.maximumf %67, %68 : vector<16x128xf32>
    %70 = arith.truncf %69 : vector<16x128xf32> to vector<16x128xbf16>
    %c1_63 = arith.constant 1 : index
    %c0_64 = arith.constant 0 : index
    %c0_65 = arith.constant 0 : index
    %71 = vector.load %arg6[%c1_63, %c0_64, %c0_65] : memref<5x128x128xbf16, #tpu.memory_space<vmem>>, vector<1x128x128xbf16>
    %72 = vector.shape_cast %71 : vector<1x128x128xbf16> to vector<128x128xbf16>
    %cst_66 = arith.constant dense<0.000000e+00> : vector<16x128xf32>
    %73 = tpu.matmul %70, %72, %cst_66 {dimension_numbers = #tpu.dot_dimension_numbers<[1], [0], [0], [1], [0, 0, 1, 1], [], []>} : vector<16x128xbf16>, vector<128x128xbf16>, vector<16x128xf32> -> vector<16x128xf32>
    %74 = arith.addf %59, %73 : vector<16x128xf32>
    %c4_67 = arith.constant 4 : index
    %c0_68 = arith.constant 0 : index
    %75 = tpu.strided_load %arg11[%c4_67, %c0_68] {strides = array<i32: 16, 1>} : memref<256x128xf32, #tpu.memory_space<vmem>>, vector<16x128xf32>
    %c5 = arith.constant 5 : index
    %c0_69 = arith.constant 0 : index
    %76 = tpu.strided_load %arg11[%c5, %c0_69] {strides = array<i32: 16, 1>} : memref<256x128xf32, #tpu.memory_space<vmem>>, vector<16x128xf32>
    %77 = arith.addf %75, %76 : vector<16x128xf32>
    %cst_70 = arith.constant 5.000000e-01 : f32
    %78 = vector.broadcast %cst_70 : f32 to vector<16x128xf32>
    %79 = arith.mulf %78, %77 : vector<16x128xf32>
    %c0_71 = arith.constant 0 : index
    %c0_72 = arith.constant 0 : index
    %80 = vector.load %arg5[%c0_71, %c0_72] : memref<1x128xf32, #tpu.memory_space<vmem>>, vector<1x128xf32>
    %81 = vector.broadcast %80 : vector<1x128xf32> to vector<16x128xf32>
    %82 = arith.addf %79, %81 : vector<16x128xf32>
    %cst_73 = arith.constant 0.000000e+00 : f32
    %83 = vector.broadcast %cst_73 : f32 to vector<16x128xf32>
    %84 = arith.maximumf %82, %83 : vector<16x128xf32>
    %85 = arith.truncf %84 : vector<16x128xf32> to vector<16x128xbf16>
    %c2_74 = arith.constant 2 : index
    %c0_75 = arith.constant 0 : index
    %c0_76 = arith.constant 0 : index
    %86 = vector.load %arg6[%c2_74, %c0_75, %c0_76] : memref<5x128x128xbf16, #tpu.memory_space<vmem>>, vector<1x128x128xbf16>
    %87 = vector.shape_cast %86 : vector<1x128x128xbf16> to vector<128x128xbf16>
    %cst_77 = arith.constant dense<0.000000e+00> : vector<16x128xf32>
    %88 = tpu.matmul %85, %87, %cst_77 {dimension_numbers = #tpu.dot_dimension_numbers<[1], [0], [0], [1], [0, 0, 1, 1], [], []>} : vector<16x128xbf16>, vector<128x128xbf16>, vector<16x128xf32> -> vector<16x128xf32>
    %89 = arith.addf %74, %88 : vector<16x128xf32>
    %c6 = arith.constant 6 : index
    %c0_78 = arith.constant 0 : index
    %90 = tpu.strided_load %arg11[%c6, %c0_78] {strides = array<i32: 16, 1>} : memref<256x128xf32, #tpu.memory_space<vmem>>, vector<16x128xf32>
    %c7 = arith.constant 7 : index
    %c0_79 = arith.constant 0 : index
    %91 = tpu.strided_load %arg11[%c7, %c0_79] {strides = array<i32: 16, 1>} : memref<256x128xf32, #tpu.memory_space<vmem>>, vector<16x128xf32>
    %92 = arith.addf %90, %91 : vector<16x128xf32>
    %cst_80 = arith.constant 5.000000e-01 : f32
    %93 = vector.broadcast %cst_80 : f32 to vector<16x128xf32>
    %94 = arith.mulf %93, %92 : vector<16x128xf32>
    %c0_81 = arith.constant 0 : index
    %c0_82 = arith.constant 0 : index
    %95 = vector.load %arg5[%c0_81, %c0_82] : memref<1x128xf32, #tpu.memory_space<vmem>>, vector<1x128xf32>
    %96 = vector.broadcast %95 : vector<1x128xf32> to vector<16x128xf32>
    %97 = arith.addf %94, %96 : vector<16x128xf32>
    %cst_83 = arith.constant 0.000000e+00 : f32
    %98 = vector.broadcast %cst_83 : f32 to vector<16x128xf32>
    %99 = arith.maximumf %97, %98 : vector<16x128xf32>
    %100 = arith.truncf %99 : vector<16x128xf32> to vector<16x128xbf16>
    %c3_84 = arith.constant 3 : index
    %c0_85 = arith.constant 0 : index
    %c0_86 = arith.constant 0 : index
    %101 = vector.load %arg6[%c3_84, %c0_85, %c0_86] : memref<5x128x128xbf16, #tpu.memory_space<vmem>>, vector<1x128x128xbf16>
    %102 = vector.shape_cast %101 : vector<1x128x128xbf16> to vector<128x128xbf16>
    %cst_87 = arith.constant dense<0.000000e+00> : vector<16x128xf32>
    %103 = tpu.matmul %100, %102, %cst_87 {dimension_numbers = #tpu.dot_dimension_numbers<[1], [0], [0], [1], [0, 0, 1, 1], [], []>} : vector<16x128xbf16>, vector<128x128xbf16>, vector<16x128xf32> -> vector<16x128xf32>
    %104 = arith.addf %89, %103 : vector<16x128xf32>
    %c8 = arith.constant 8 : index
    %c0_88 = arith.constant 0 : index
    %105 = tpu.strided_load %arg11[%c8, %c0_88] {strides = array<i32: 16, 1>} : memref<256x128xf32, #tpu.memory_space<vmem>>, vector<16x128xf32>
    %c9 = arith.constant 9 : index
    %c0_89 = arith.constant 0 : index
    %106 = tpu.strided_load %arg11[%c9, %c0_89] {strides = array<i32: 16, 1>} : memref<256x128xf32, #tpu.memory_space<vmem>>, vector<16x128xf32>
    %107 = arith.addf %105, %106 : vector<16x128xf32>
    %cst_90 = arith.constant 5.000000e-01 : f32
    %108 = vector.broadcast %cst_90 : f32 to vector<16x128xf32>
    %109 = arith.mulf %108, %107 : vector<16x128xf32>
    %c0_91 = arith.constant 0 : index
    %c0_92 = arith.constant 0 : index
    %110 = vector.load %arg5[%c0_91, %c0_92] : memref<1x128xf32, #tpu.memory_space<vmem>>, vector<1x128xf32>
    %111 = vector.broadcast %110 : vector<1x128xf32> to vector<16x128xf32>
    %112 = arith.addf %109, %111 : vector<16x128xf32>
    %cst_93 = arith.constant 0.000000e+00 : f32
    %113 = vector.broadcast %cst_93 : f32 to vector<16x128xf32>
    %114 = arith.maximumf %112, %113 : vector<16x128xf32>
    %115 = arith.truncf %114 : vector<16x128xf32> to vector<16x128xbf16>
    %c4_94 = arith.constant 4 : index
    %c0_95 = arith.constant 0 : index
    %c0_96 = arith.constant 0 : index
    %116 = vector.load %arg6[%c4_94, %c0_95, %c0_96] : memref<5x128x128xbf16, #tpu.memory_space<vmem>>, vector<1x128x128xbf16>
    %117 = vector.shape_cast %116 : vector<1x128x128xbf16> to vector<128x128xbf16>
    %cst_97 = arith.constant dense<0.000000e+00> : vector<16x128xf32>
    %118 = tpu.matmul %115, %117, %cst_97 {dimension_numbers = #tpu.dot_dimension_numbers<[1], [0], [0], [1], [0, 0, 1, 1], [], []>} : vector<16x128xbf16>, vector<128x128xbf16>, vector<16x128xf32> -> vector<16x128xf32>
    %119 = arith.addf %104, %118 : vector<16x128xf32>
    %c0_98 = arith.constant 0 : index
    %c0_99 = arith.constant 0 : index
    %120 = vector.load %arg7[%c0_98, %c0_99] : memref<1x128xf32, #tpu.memory_space<vmem>>, vector<1x128xf32>
    %121 = vector.broadcast %120 : vector<1x128xf32> to vector<16x128xf32>
    %122 = arith.addf %119, %121 : vector<16x128xf32>
    %c0_100 = arith.constant 0 : index
    %c0_101 = arith.constant 0 : index
    %123 = vector.load %arg8[%c0_100, %c0_101] : memref<16x128xf32, #tpu.memory_space<vmem>>, vector<16x128xf32>
    tpu.vector_store %arg8[%c0_100, %c0_101], %122 {strides = array<i32>} : memref<16x128xf32, #tpu.memory_space<vmem>>, vector<16x128xf32>,
    return
  }
  func.func @transform_0(%arg0: i32) -> (i32, i32) {
    %c0_i32 = arith.constant 0 : i32
    %c0_i32_0 = arith.constant 0 : i32
    return %arg0, %c0_i32 : i32, i32
  }
  func.func @transform_1(%arg0: i32) -> (i32, i32) {
    %c0_i32 = arith.constant 0 : i32
    %c0_i32_0 = arith.constant 0 : i32
    %c0_i32_1 = arith.constant 0 : i32
    return %c0_i32, %c0_i32_0 : i32, i32
  }
  func.func @transform_2(%arg0: i32) -> (i32, i32) {
    %c0_i32 = arith.constant 0 : i32
    %c0_i32_0 = arith.constant 0 : i32
    %c0_i32_1 = arith.constant 0 : i32
    return %c0_i32, %c0_i32_0 : i32, i32
  }
  func.func @transform_3(%arg0: i32) -> (i32, i32, i32) {
    %c0_i32 = arith.constant 0 : i32
    %c0_i32_0 = arith.constant 0 : i32
    %c0_i32_1 = arith.constant 0 : i32
    %c0_i32_2 = arith.constant 0 : i32
    return %c0_i32, %c0_i32_0, %c0_i32_1 : i32, i32, i32
  }
  func.func @transform_4(%arg0: i32) -> (i32, i32) {
    %c0_i32 = arith.constant 0 : i32
    %c0_i32_0 = arith.constant 0 : i32
    %c0_i32_1 = arith.constant 0 : i32
    return %c0_i32, %c0_i32_0 : i32, i32
  }
  func.func @transform_5(%arg0: i32) -> (i32, i32, i32) {
    %c0_i32 = arith.constant 0 : i32
    %c0_i32_0 = arith.constant 0 : i32
    %c0_i32_1 = arith.constant 0 : i32
    %c0_i32_2 = arith.constant 0 : i32
    return %c0_i32, %c0_i32_0, %c0_i32_1 : i32, i32, i32
  }
  func.func @transform_6(%arg0: i32) -> (i32, i32) {
    %c0_i32 = arith.constant 0 : i32
    %c0_i32_0 = arith.constant 0 : i32
    %c0_i32_1 = arith.constant 0 : i32
    return %c0_i32, %c0_i32_0 : i32, i32
  }
  func.func @transform_7(%arg0: i32) -> (i32, i32) {
    %c0_i32 = arith.constant 0 : i32
    %c0_i32_0 = arith.constant 0 : i32
    return %arg0, %c0_i32 : i32, i32
  }
}

</mosaic_0001>

<bundles_post_ra>
// kernel: tpu_custom_call.1
= control target key start
LH: loop header
LB: loop body
LE: loop exit
PB: predicated region body
PF: predicated region fallthrough
CT: control target
= control target key end

     0   :  { %12 = vsyncpa [#allocation6], 0  ;;  %s5689_s0 = inlined_call_operand.vmem [shape: bf16[1024,160], index: 0, kind: input, shape index: {}]   ;;  %s5690_s1 = inlined_call_operand.vmem [shape: bf16[160,128], index: 1, kind: input, shape index: {}]   ;;  %s5691_s2 = inlined_call_operand.vmem [shape: f32[1,128], index: 2, kind: input, shape index: {}]   ;;  %s5692_s3 = inlined_call_operand.vmem [shape: bf16[5,128,128], index: 3, kind: input, shape index: {}]   ;;  %s5693_s4 = inlined_call_operand.vmem [shape: f32[1,128], index: 4, kind: input, shape index: {}]   ;;  %s5694_s5 = inlined_call_operand.vmem [shape: bf16[5,128,128], index: 5, kind: input, shape index: {}]   ;;  %s5695_s6 = inlined_call_operand.vmem [shape: f32[1,128], index: 6, kind: input, shape index: {}]   ;;  %s5696_s7 = inlined_call_operand.hbm [shape: f32[32,128], index: 7, kind: output, shape index: {}]  }
   0x1   :  { %14 = vsyncpa [#allocation6 + $0x1], 0  ;;  %s5065_s24 = smov 0   ;;  %s5067_s25 = smov 0  }
   0x2   :  { %s5069_s26 = smov 0   ;;  %s5071_s27 = smov 0  }
   0x3 LB: > { %s5086_s28 = sadd.s32 4294967295, %s5017_s27   ;;  %s3759_s29 = sadd.s32 4294967294, %s5017_s27   ;;  %s5017_s27 = sphi %s5071_s27, %s5702_s27   ;;  %s5013_s26 = sphi %s5069_s26, %s5701_s26   ;;  %s5009_s25 = sphi %s5067_s25, %s5700_s25   ;;  %s5005_s24 = sphi %s5065_s24, %s5699_s24  }
   0x4   : > { %s5090_s30 = sadd.s32 1, %s5017_s27   ;;  %s179_s8 = sadd.s32 1, %s5013_s26 }
   0x5   : > { %s176_s9 = ssub.s32 %s5017_s27, %s5090_s30  ;;  %p189_p0 = scmp.ne.s32.totalorder %s5013_s26, %s5009_s25 }
   0x6   : > { %p177_p1 = scmp.eq.s32.totalorder %s176_s9, 0  ;;  %p190_p2 = scmp.eq.s32.totalorder %s5086_s28, 1 }
   0x7   : > { %p195_p3 = scmp.ne.s32.totalorder %s5009_s25, %s5005_s24  ;;  %p196_p4 = scmp.eq.s32.totalorder %s3759_s29, 1 }
   0x8   : > { %s5101_s10 = scalar_select %p177_p1, %s5013_s26, %s179_s8  }
   0x9   : > { %p5103_p5 = por %p190_p2, %p189_p0  ;;  %p5107_p6 = por %p196_p4, %p195_p3 }
   0xa   : > { %p3762_p7 = scmp.ge.s32.totalorder %s5017_s27, 1  ;;  %p242_p8 = scmp.lt.s32.totalorder %s5017_s27, 3 }
   0xc   : > { %p243_p9 = pnand %p3762_p7, %p242_p8 }
   0xd   : > { %v4768_v0 = vld [vmem:[%s5690_s1] sm:$0xff] (!%p243_p9)   ;;  %v5019_v1 = vmov (!%p243_p9), 0   ;;  %s3764_s15 = sshll.u32 (!%p243_p9), %s5086_s28, 6  ;;  %v4769_v2 = vld [vmem:[%s5690_s1 + $0x8] sm:$0xff] (!%p243_p9)   ;;  %v4770_v3 = vld [vmem:[%s5690_s1 + $0x10] sm:$0xff] (!%p243_p9)   ;;  %vm716_vm0 = vcmask (!%p243_p9), 261120  }
   0xe   : > { %246 = sbr.rel (%p243_p9) target bundleno = 1330 (0x532), region = 48  ;;  %813 = vmatprep.subr.bf16.mxu0 (!%p243_p9), %v5019_v1  ;;  %p276_p10 = scmp.lt.s32.totalorder (!%p243_p9), %s3764_s15, 127  ;;  %v4771_v4 = vld [vmem:[%s5690_s1 + $0x18] sm:$0xff] (!%p243_p9)   ;;  %v4772_v6 = vld [vmem:[%s5690_s1 + $0x20] sm:$0xff] (!%p243_p9)   ;;  %v4773_v7 = vld [vmem:[%s5690_s1 + $0x28] sm:$0xff] (!%p243_p9)   ;;  %vm5021_vm1 = vmmov (!%p243_p9), 0  }
   0xf   : > { %814 = vmatpush1.bf16.msra.mxu0 (!%p243_p9), %v4768_v0  ;;  %v4774_v8 = vld [vmem:[%s5690_s1 + $0x30] sm:$0xff] (!%p243_p9)   ;;  %v4775_v9 = vld [vmem:[%s5690_s1 + $0x38] sm:$0xff] (!%p243_p9)   ;;  %v4776_v10 = vld [vmem:[%s5690_s1 + $0x40] sm:$0xff] (!%p243_p9)   ;;  %s272_s21 = sand.u32 (!%p243_p9), 1, %s5009_s25   ;;  %s4090_s14 = sshll.u32 (!%p243_p9), %s5086_s28, 8 }
  0x10   : > { %815 = vmatprep.subr.bf16.mxu0 (!%p243_p9), %v5019_v1  ;;  %v4777_v11 = vld [vmem:[%s5690_s1 + $0x48] sm:$0xff] (!%p243_p9)   ;;  %v4871_v42 = vld [vmem:[%s5692_s3 + $0x40] sm:$0xff] (!%p243_p9)   ;;  %v4876_v46 = vld [vmem:[%s5692_s3 + $0x50] sm:$0xff] (!%p243_p9)   ;;  %s3763_s22 = sshll.u32 (!%p243_p9), %s272_s21, 4  ;;  %s5646_s16 = scalar_lea.hbm (!%p243_p9), %s5696_s7, %s4090_s14 }
  0x11   : > { %4256 = vmatprep.subr.bf16.mxu1 (!%p243_p9), %v4871_v42  ;;  %v4872_v43 = vld [vmem:[%s5692_s3 + $0x48] sm:$0xff] (!%p243_p9)   ;;  %v4877_v47 = vld [vmem:[%s5692_s3 + $0x58] sm:$0xff] (!%p243_p9)   ;;  %v4878_v50 = vld [vmem:[%s5692_s3 + $0x60] sm:$0xff] (!%p243_p9)   ;;  %s274_s9 = scalar_lea.vmem (!%p243_p9), [#allocation5], %s3763_s22  ;;  %s5648_s17 = scalar_lea.sflag (!%p243_p9), [#allocation6], %s272_s21 }
  0x12   : > { %4257 = vmatpush3.bf16.msra.mxu1 (!%p243_p9), %v4871_v42  ;;  %v4879_v51 = vld [vmem:[%s5692_s3 + $0x68] sm:$0xff] (!%p243_p9)   ;;  %v4880_v54 = vld [vmem:[%s5692_s3 + $0x70] sm:$0xff] (!%p243_p9)   ;;  %v4881_v55 = vld [vmem:[%s5692_s3 + $0x78] sm:$0xff] (!%p243_p9)   ;;  %s3697_s13 = sshll.u32 (!%p243_p9), %s274_s9, 4  ;;  %s5022_s28 = smov (!%p243_p9), [#allocation5]   ;;  %s5641_s13 = int_to_ptr.vmem [resolvable:$true] %s3697_s13 }
  0x13   : > { %816 = vmatpush1.bf16.msra.mxu0 (!%p243_p9), %v4769_v2  ;;  %4258 = vmatprep.subr.bf16.mxu1 (!%p243_p9), %v4872_v43  ;;  %s4955_s18 = scalar_lea.vmem (!%p243_p9), %s5641_s13, 256  ;;  %s4959_s19 = sshll.u32 (!%p243_p9), %s5022_s28, 4  ;;  %s4960_s19 = int_to_ptr.vmem [resolvable:$false] %s4959_s19 }
  0x14   : > { %817 = vmatprep.subr.bf16.mxu0 (!%p243_p9), %v5019_v1  ;;  %p4956_p11 = scmp.ne.s32.totalorder (!%p243_p9), %s5641_s13, %s4955_s18  ;;  %p4962_p0 = scmp.lt.s32.totalorder (!%p243_p9), %s5641_s13, %s4960_s19 }
  0x15   : > { %s5704_s15 = smov (!%p276_p10, %s3764_s15), 127 }
  0x16   : > { %s4089_s20 = sshll.u32 %s5704_s15, 3  ;;  %4259 = vmatpush3.bf16.msra.mxu1 %v4872_v43  ;;  %p4957_p12 = pnand %p4956_p11, %p5103_p5 }
  0x17   : > { %s5126_s23 = scalar_lea.vmem %s5689_s0, %s4089_s20  ;;  %818 = vmatpush1.bf16.msra.mxu0 %v4770_v3  ;;  %4260 = vmatprep.subr.bf16.mxu1 %v4876_v46  ;;  %s4961_s20 = scalar_lea.vmem %s4960_s19, 512 }
  0x18   : > { %819 = vmatprep.subr.bf16.mxu0 %v5019_v1  ;;  %v4780_v5 = vld [vmem:[%s5126_s23 + $0x4] ss:$8 sps:$4 sm:$0xff]   ;;  %v4778_v12 = vld [vmem:[%s5126_s23] ss:$8 sps:$4 sm:$0xff]   ;;  %v4781_v13 = vld [vmem:[%s5126_s23 + $0x14] ss:$8 sps:$4 sm:$0xff]   ;;  %p4958_p13 = pneg %p4957_p12  ;;  %p4963_p1 = scmp.lt.s32.totalorder %s4961_s20, %s4955_s18 }
  0x19   : > { %3841 = vmatprep.mubr.msk.bf16.mxu0 %vm716_vm0, %v4780_v5  ;;  %v4783_v14 = vld [vmem:[%s5126_s23 + $0x10] ss:$8 sps:$4 sm:$0xff]   ;;  %v4784_v15 = vld [vmem:[%s5126_s23 + $0x24] ss:$8 sps:$4 sm:$0xff]   ;;  %v4786_v16 = vld [vmem:[%s5126_s23 + $0x20] ss:$8 sps:$4 sm:$0xff]  }
  0x1a   : > { %v4787_v17 = vld [vmem:[%s5126_s23 + $0x34] ss:$8 sps:$4 sm:$0xff]   ;;  %v4789_v18 = vld [vmem:[%s5126_s23 + $0x30] ss:$8 sps:$4 sm:$0xff]   ;;  %v4790_v19 = vld [vmem:[%s5126_s23 + $0x44] ss:$8 sps:$4 sm:$0xff]   ;;  %4261 = vmatpush3.bf16.msra.mxu1 %v4876_v46  ;;  %p4964_p2 = por %p4963_p1, %p4962_p0 }
  0x1b   : > { %820 = vmatpush1.bf16.msra.mxu0 %v4771_v4  ;;  %v4792_v20 = vld [vmem:[%s5126_s23 + $0x40] ss:$8 sps:$4 sm:$0xff]   ;;  %v4793_v21 = vld [vmem:[%s5126_s23 + $0x54] ss:$8 sps:$4 sm:$0xff]   ;;  %v4795_v22 = vld [vmem:[%s5126_s23 + $0x50] ss:$8 sps:$4 sm:$0xff]   ;;  %4262 = vmatprep.subr.bf16.mxu1 %v4877_v47 }
  0x1c   : > { %821 = vmatprep.subr.bf16.mxu0 %v5019_v1  ;;  %v4796_v23 = vld [vmem:[%s5126_s23 + $0x64] ss:$8 sps:$4 sm:$0xff]   ;;  %v4798_v24 = vld [vmem:[%s5126_s23 + $0x60] ss:$8 sps:$4 sm:$0xff]   ;;  %v4799_v25 = vld [vmem:[%s5126_s23 + $0x74] ss:$8 sps:$4 sm:$0xff]   ;;  %p4965_p3 = pnand %p4964_p2, %p4958_p13 }
  0x1d   : > { %v4801_v26 = vld [vmem:[%s5126_s23 + $0x70] ss:$8 sps:$4 sm:$0xff]   ;;  %v4802_v27 = vld [vmem:[%s5126_s23 + $0x84] ss:$8 sps:$4 sm:$0xff]   ;;  %v4804_v28 = vld [vmem:[%s5126_s23 + $0x80] ss:$8 sps:$4 sm:$0xff]  }
  0x1e   : > { %v4805_v29 = vld [vmem:[%s5126_s23 + $0x94] ss:$8 sps:$4 sm:$0xff]   ;;  %v4807_v30 = vld [vmem:[%s5126_s23 + $0x90] ss:$8 sps:$4 sm:$0xff]   ;;  %v4808_v31 = vld [vmem:[%s5126_s23 + $0xa4] ss:$8 sps:$4 sm:$0xff]   ;;  %4263 = vmatpush3.bf16.msra.mxu1 %v4877_v47 }
  0x1f   : > { %822 = vmatpush1.bf16.msra.mxu0 %v4772_v6  ;;  %v4810_v32 = vld [vmem:[%s5126_s23 + $0xa0] ss:$8 sps:$4 sm:$0xff]   ;;  %v4811_v33 = vld [vmem:[%s5126_s23 + $0xb4] ss:$8 sps:$4 sm:$0xff]   ;;  %v4813_v34 = vld [vmem:[%s5126_s23 + $0xb0] ss:$8 sps:$4 sm:$0xff]   ;;  %4264 = vmatprep.subr.bf16.mxu1 %v4878_v50 }
  0x20   : > { %823 = vmatprep.subr.bf16.mxu0 %v5019_v1  ;;  %v4814_v35 = vld [vmem:[%s5126_s23 + $0xc4] ss:$8 sps:$4 sm:$0xff]   ;;  %v4816_v36 = vld [vmem:[%s5126_s23 + $0xc0] ss:$8 sps:$4 sm:$0xff]   ;;  %v4817_v37 = vld [vmem:[%s5126_s23 + $0xd4] ss:$8 sps:$4 sm:$0xff]  }
  0x21   : > { %v4819_v38 = vld [vmem:[%s5126_s23 + $0xd0] ss:$8 sps:$4 sm:$0xff]   ;;  %v4820_v39 = vld [vmem:[%s5126_s23 + $0xe4] ss:$8 sps:$4 sm:$0xff]   ;;  %v4822_v40 = vld [vmem:[%s5126_s23 + $0xe0] ss:$8 sps:$4 sm:$0xff]  }
  0x22   : > { %v4823_v41 = vld [vmem:[%s5126_s23 + $0xf4] ss:$8 sps:$4 sm:$0xff]   ;;  %v4825_v44 = vld [vmem:[%s5126_s23 + $0xf0] ss:$8 sps:$4 sm:$0xff]   ;;  %v4826_v45 = vld [vmem:[%s5126_s23 + $0x104] ss:$8 sps:$4 sm:$0xff]   ;;  %4265 = vmatpush3.bf16.msra.mxu1 %v4878_v50 }
  0x23   : > { %824 = vmatpush1.bf16.msra.mxu0 %v4773_v7  ;;  %v4828_v48 = vld [vmem:[%s5126_s23 + $0x100] ss:$8 sps:$4 sm:$0xff]   ;;  %v4829_v49 = vld [vmem:[%s5126_s23 + $0x114] ss:$8 sps:$4 sm:$0xff]   ;;  %v4831_v52 = vld [vmem:[%s5126_s23 + $0x110] ss:$8 sps:$4 sm:$0xff]   ;;  %4266 = vmatprep.subr.bf16.mxu1 %v4879_v51 }
  0x24   : > { %825 = vmatprep.subr.bf16.mxu0 %v5019_v1  ;;  %v4832_v53 = vld [vmem:[%s5126_s23 + $0x124] ss:$8 sps:$4 sm:$0xff]   ;;  %v4834_v56 = vld [vmem:[%s5126_s23 + $0x120] ss:$8 sps:$4 sm:$0xff]   ;;  %v4835_v57 = vld [vmem:[%s5126_s23 + $0x134] ss:$8 sps:$4 sm:$0xff]  }
  0x25   : > { %v4837_v58 = vld [vmem:[%s5126_s23 + $0x130] ss:$8 sps:$4 sm:$0xff]   ;;  %v4838_v59 = vld [vmem:[%s5126_s23 + $0x144] ss:$8 sps:$4 sm:$0xff]   ;;  %v4840_v60 = vld [vmem:[%s5126_s23 + $0x140] ss:$8 sps:$4 sm:$0xff]  }
  0x26   : > { %4267 = vmatpush3.bf16.msra.mxu1 %v4879_v51  ;;  %v4841_v61 = vld [vmem:[%s5126_s23 + $0x154] ss:$8 sps:$4 sm:$0xff]   ;;  %v4843_v62 = vld [vmem:[%s5126_s23 + $0x150] ss:$8 sps:$4 sm:$0xff]   ;;  %v4844_v63 = vld [vmem:[%s5126_s23 + $0x164] ss:$8 sps:$4 sm:$0xff]  }
  0x27   : > { %826 = vmatpush1.bf16.msra.mxu0 %v4774_v8  ;;  %4268 = vmatprep.subr.bf16.mxu1 %v4880_v54  ;;  %v4846_v0 = vld [vmem:[%s5126_s23 + $0x160] ss:$8 sps:$4 sm:$0xff]   ;;  %v4849_v2 = vld [vmem:[%s5126_s23 + $0x170] ss:$8 sps:$4 sm:$0xff]   ;;  %v4850_v3 = vld [vmem:[%s5126_s23 + $0x184] ss:$8 sps:$4 sm:$0xff]  }
  0x28   : > { %827 = vmatprep.subr.bf16.mxu0 %v5019_v1  ;;  %v4852_v4 = vld [vmem:[%s5126_s23 + $0x180] ss:$8 sps:$4 sm:$0xff]   ;;  %v4853_v5 = vld [vmem:[%s5126_s23 + $0x194] ss:$8 sps:$4 sm:$0xff]   ;;  %v4855_v6 = vld [vmem:[%s5126_s23 + $0x190] ss:$8 sps:$4 sm:$0xff]  }
  0x29   : > { %v4856_v7 = vld [vmem:[%s5126_s23 + $0x1a4] ss:$8 sps:$4 sm:$0xff]   ;;  %v4858_v8 = vld [vmem:[%s5126_s23 + $0x1a0] ss:$8 sps:$4 sm:$0xff]   ;;  %v4873_v43 = vld [vmem:[%s5126_s23 + $0x1f4] ss:$8 sps:$4 sm:$0xff]  }
  0x2a   : > { %4269 = vmatpush3.bf16.msra.mxu1 %v4880_v54  ;;  %v4870_v42 = vld [vmem:[%s5126_s23 + $0x1e0] ss:$8 sps:$4 sm:$0xff]  }
  0x2b   : > { %828 = vmatpush1.bf16.msra.mxu0 %v4775_v9  ;;  %4270 = vmatprep.subr.bf16.mxu1 %v4881_v55  ;;  %v4859_v9 = vld [vmem:[%s5126_s23 + $0x1b4] ss:$8 sps:$4 sm:$0xff]  }
  0x2c   : > { %829 = vmatprep.subr.bf16.mxu0 %v5019_v1 }
  0x2e   : > { %4271 = vmatpush3.bf16.msra.mxu1 %v4881_v55  ;;  %v4875_v55 = vld [vmem:[%s5126_s23 + $0x1f0] ss:$8 sps:$4 sm:$0xff]  }
  0x2f   : > { %830 = vmatpush1.bf16.msra.mxu0 %v4776_v10 }
  0x30   : > { %831 = vmatprep.subr.bf16.mxu0 %v5019_v1  ;;  %v4847_v1 = vld [vmem:[%s5126_s23 + $0x174] ss:$8 sps:$4 sm:$0xff]  }
  0x33   : > { %832 = vmatpush1.bf16.msra.mxu0 %v4777_v11 }
  0x36   : > { %846 = vmatmul.mubr.bf16.vlgmr.msra.gmra.mrb[0].mxu0 %v4778_v12  ;;  %v4861_v12 = vld [vmem:[%s5126_s23 + $0x1b0] ss:$8 sps:$4 sm:$0xff]  }
  0x37   : > { %3842 = vmatprep.mubr.msk.bf16.mxu0 %vm716_vm0, %v4781_v13 }
  0x3e   : > { %854 = vmatmul.mubr.bf16.gmra.mrb[4].mxu0 %v4783_v14  ;;  %v4862_v14 = vld [vmem:[%s5126_s23 + $0x1c4] ss:$8 sps:$4 sm:$0xff]  }
  0x3f   : > { %3843 = vmatprep.mubr.msk.bf16.mxu0 %vm716_vm0, %v4784_v15 }
  0x46   : > { %862 = vmatmul.mubr.bf16.gmra.mrb[8].mxu0 %v4786_v16 }
  0x47   : > { %3844 = vmatprep.mubr.msk.bf16.mxu0 %vm716_vm0, %v4787_v17 }
  0x4e   : > { %870 = vmatmul.mubr.bf16.gmra.mrb[12].mxu0 %v4789_v18  ;;  %v4864_v18 = vld [vmem:[%s5126_s23 + $0x1c0] ss:$8 sps:$4 sm:$0xff]  }
  0x4f   : > { %3845 = vmatprep.mubr.msk.bf16.mxu0 %vm716_vm0, %v4790_v19  ;;  %v4865_v19 = vld [vmem:[%s5126_s23 + $0x1d4] ss:$8 sps:$4 sm:$0xff]  }
  0x56   : > { %878 = vmatmul.mubr.bf16.gmra.mrb[16].mxu0 %v4792_v20 }
  0x57   : > { %3846 = vmatprep.mubr.msk.bf16.mxu0 %vm716_vm0, %v4793_v21 }
  0x5e   : > { %886 = vmatmul.mubr.bf16.gmra.mrb[20].mxu0 %v4795_v22 }
  0x5f   : > { %3847 = vmatprep.mubr.msk.bf16.mxu0 %vm716_vm0, %v4796_v23 }
  0x66   : > { %894 = vmatmul.mubr.bf16.gmra.mrb[24].mxu0 %v4798_v24 }
  0x67   : > { %3848 = vmatprep.mubr.msk.bf16.mxu0 %vm716_vm0, %v4799_v25  ;;  %v5264_v25 = vld [vmem:[%s5691_s2] ss:$0 sm:$0xff] }
  0x6e   : > { %902 = vmatmul.mubr.bf16.gmra.mrb[28].mxu0 %v4801_v26 }
  0x6f   : > { %3849 = vmatprep.mubr.msk.bf16.mxu0 %vm716_vm0, %v4802_v27 }
  0x76   : > { %910 = vmatmul.mubr.bf16.gmra.mrb[32].mxu0 %v4804_v28 }
  0x77   : > { %3850 = vmatprep.mubr.msk.bf16.mxu0 %vm716_vm0, %v4805_v29 }
  0x7e   : > { %918 = vmatmul.mubr.bf16.gmra.mrb[36].mxu0 %v4807_v30  ;;  %v4867_v30 = vld [vmem:[%s5126_s23 + $0x1d0] ss:$8 sps:$4 sm:$0xff]  }
  0x7f   : > { %3851 = vmatprep.mubr.msk.bf16.mxu0 %vm716_vm0, %v4808_v31  ;;  %v4868_v31 = vld [vmem:[%s5126_s23 + $0x1e4] ss:$8 sps:$4 sm:$0xff]  }
  0x86   : > { %926 = vmatmul.mubr.bf16.gmra.mrb[40].mxu0 %v4810_v32 }
  0x87   : > { %3852 = vmatprep.mubr.msk.bf16.mxu0 %vm716_vm0, %v4811_v33 }
  0x8e   : > { %934 = vmatmul.mubr.bf16.gmra.mrb[44].mxu0 %v4813_v34 }
  0x8f   : > { %3853 = vmatprep.mubr.msk.bf16.mxu0 %vm716_vm0, %v4814_v35 }
  0x96   : > { %942 = vmatmul.mubr.bf16.gmra.mrb[48].mxu0 %v4816_v36 }
  0x97   : > { %3854 = vmatprep.mubr.msk.bf16.mxu0 %vm716_vm0, %v4817_v37 }
  0x9e   : > { %950 = vmatmul.mubr.bf16.gmra.mrb[52].mxu0 %v4819_v38 }
  0x9f   : > { %3855 = vmatprep.mubr.msk.bf16.mxu0 %vm716_vm0, %v4820_v39 }
  0xa6   : > { %958 = vmatmul.mubr.bf16.gmra.mrb[56].mxu0 %v4822_v40 }
  0xa7   : > { %3856 = vmatprep.mubr.msk.bf16.mxu0 %vm716_vm0, %v4823_v41 }
  0xae   : > { %966 = vmatmul.mubr.bf16.gmra.mrb[60].mxu0 %v4825_v44 }
  0xaf   : > { %3857 = vmatprep.mubr.msk.bf16.mxu0 %vm716_vm0, %v4826_v45 }
  0xb6   : > { %974 = vmatmul.mubr.bf16.gmra.mrb[64].mxu0 %v4828_v48 }
  0xb7   : > { %3858 = vmatprep.mubr.msk.bf16.mxu0 %vm716_vm0, %v4829_v49 }
  0xbe   : > { %982 = vmatmul.mubr.bf16.gmra.mrb[68].mxu0 %v4831_v52 }
  0xbf   : > { %3859 = vmatprep.mubr.msk.bf16.mxu0 %vm716_vm0, %v4832_v53 }
  0xc6   : > { %990 = vmatmul.mubr.bf16.gmra.mrb[72].mxu0 %v4834_v56 }
  0xc7   : > { %3860 = vmatprep.mubr.msk.bf16.mxu0 %vm716_vm0, %v4835_v57 }
  0xce   : > { %998 = vmatmul.mubr.bf16.gmra.mrb[76].mxu0 %v4837_v58 }
  0xcf   : > { %3861 = vmatprep.mubr.msk.bf16.mxu0 %vm716_vm0, %v4838_v59 }
  0xd6   : > { %1006 = vmatmul.mubr.bf16.gmra.mrb[80].mxu0 %v4840_v60 }
  0xd7   : > { %3862 = vmatprep.mubr.msk.bf16.mxu0 %vm716_vm0, %v4841_v61 }
  0xde   : > { %1014 = vmatmul.mubr.bf16.gmra.mrb[84].mxu0 %v4843_v62 }
  0xdf   : > { %3863 = vmatprep.mubr.msk.bf16.mxu0 %vm716_vm0, %v4844_v63 }
  0xe6   : > { %1022 = vmatmul.mubr.bf16.gmra.mrb[88].mxu0 %v4846_v0 }
  0xe7   : > { %3864 = vmatprep.mubr.msk.bf16.mxu0 %vm716_vm0, %v4847_v1 }
  0xee   : > { %1030 = vmatmul.mubr.bf16.gmra.mrb[92].mxu0 %v4849_v2 }
  0xef   : > { %3865 = vmatprep.mubr.msk.bf16.mxu0 %vm716_vm0, %v4850_v3 }
  0xf6   : > { %1038 = vmatmul.mubr.bf16.gmra.mrb[96].mxu0 %v4852_v4 }
  0xf7   : > { %3866 = vmatprep.mubr.msk.bf16.mxu0 %vm716_vm0, %v4853_v5 }
  0xfe   : > { %1046 = vmatmul.mubr.bf16.gmra.mrb[100].mxu0 %v4855_v6 }
  0xff   : > { %3867 = vmatprep.mubr.msk.bf16.mxu0 %vm716_vm0, %v4856_v7 }
 0x106   : > { %1054 = vmatmul.mubr.bf16.gmra.mrb[104].mxu0 %v4858_v8 }
 0x107   : > { %3868 = vmatprep.mubr.msk.bf16.mxu0 %vm716_vm0, %v4859_v9 }
 0x109   : > { %v847_v10 = vpop.f32.mrb[0].mxu0 }
 0x10a   : > { %1102 = vst [vmem:[#allocation2] sm:$0xff] %v847_v10  ;;  %v849_v11 = vpop.f32.mrb[1].mxu0 }
 0x10b   : > { %v850_v13 = vpop.f32.mrb[2].mxu0 }
 0x10c   : > { %1103 = vst [vmem:[#allocation2 + $0x8] sm:$0xff] %v850_v13  ;;  %v852_v15 = vpop.f32.mrb[3].mxu0 }
 0x10e   : > { %1062 = vmatmul.mubr.bf16.gmra.mrb[108].mxu0 %v4861_v12 }
 0x10f   : > { %3869 = vmatprep.mubr.msk.bf16.mxu0 %vm716_vm0, %v4862_v14 }
 0x111   : > { %v855_v16 = vpop.f32.mrb[4].mxu0 }
 0x112   : > { %1104 = vst [vmem:[#allocation2 + $0x10] sm:$0xff] %v855_v16  ;;  %v857_v17 = vpop.f32.mrb[5].mxu0 }
 0x113   : > { %v1166_v20 = vld [vmem:[#allocation2] ss:$2 sm:$0xff]  ;;  %v1230_v21 = vld [vmem:[#allocation2 + $0x1] ss:$2 sm:$0xff]  ;;  %v858_v22 = vpop.f32.mrb[6].mxu0 }
 0x114   : > { %v1293_v23 = vadd.f32 %v1230_v21, %v1166_v20  ;;  %1105 = vst [vmem:[#allocation2 + $0x18] sm:$0xff] %v858_v22  ;;  %v860_v24 = vpop.f32.mrb[7].mxu0 }
 0x116   : > { %v1325_v26 = vmul.f32 0.5, %v1293_v23  ;;  %1070 = vmatmul.mubr.bf16.gmra.mrb[112].mxu0 %v4864_v18 }
 0x117   : > { %3870 = vmatprep.mubr.msk.bf16.mxu0 %vm716_vm0, %v4865_v19 }
 0x118   : > { %v1364_v27 = vadd.f32 %v5264_v25, %v1325_v26 }
 0x119   : > { %v863_v28 = vpop.f32.mrb[8].mxu0 }
 0x11a   : > { %1106 = vst [vmem:[#allocation2 + $0x20] sm:$0xff] %v863_v28  ;;  %v865_v29 = vpop.f32.mrb[9].mxu0  ;;  %v1396_v32 = vmax.f32 %v1364_v27, 0.0 }
 0x11b   : > { %v1168_v33 = vld [vmem:[#allocation2 + $0x10] ss:$2 sm:$0xff]  ;;  %v1232_v34 = vld [vmem:[#allocation2 + $0x11] ss:$2 sm:$0xff]  ;;  %v866_v35 = vpop.f32.mrb[10].mxu0 }
 0x11c   : > { %v1294_v36 = vadd.f32 %v1232_v34, %v1168_v33  ;;  %1107 = vst [vmem:[#allocation2 + $0x28] sm:$0xff] %v866_v35  ;;  %v868_v37 = vpop.f32.mrb[11].mxu0  ;;  %1428 = vst [vmem:[#allocation3] sm:$0xff] %v1396_v32 }
 0x11e   : > { %v1326_v38 = vmul.f32 0.5, %v1294_v36  ;;  %1078 = vmatmul.mubr.bf16.gmra.mrb[116].mxu0 %v4867_v30 }
 0x11f   : > { %3871 = vmatprep.mubr.msk.bf16.mxu0 %vm716_vm0, %v4868_v31 }
 0x120   : > { %v1365_v39 = vadd.f32 %v5264_v25, %v1326_v38 }
 0x121   : > { %v871_v40 = vpop.f32.mrb[12].mxu0 }
 0x122   : > { %1108 = vst [vmem:[#allocation2 + $0x30] sm:$0xff] %v871_v40  ;;  %v873_v41 = vpop.f32.mrb[13].mxu0  ;;  %v1397_v44 = vmax.f32 %v1365_v39, 0.0 }
 0x123   : > { %v1170_v45 = vld [vmem:[#allocation2 + $0x20] ss:$2 sm:$0xff]  ;;  %v1234_v46 = vld [vmem:[#allocation2 + $0x21] ss:$2 sm:$0xff]  ;;  %v874_v47 = vpop.f32.mrb[14].mxu0 }
 0x124   : > { %v1295_v48 = vadd.f32 %v1234_v46, %v1170_v45  ;;  %1109 = vst [vmem:[#allocation2 + $0x38] sm:$0xff] %v874_v47  ;;  %v876_v49 = vpop.f32.mrb[15].mxu0  ;;  %1429 = vst [vmem:[#allocation3 + $0x8] sm:$0xff] %v1397_v44  ;;  %v5274_v50 = vpack.c.bf16 %v1397_v44, %v1396_v32 }
 0x126   : > { %v1327_v51 = vmul.f32 0.5, %v1295_v48  ;;  %1086 = vmatmul.mubr.bf16.gmra.mrb[120].mxu0 %v4870_v42 }
 0x127   : > { %3872 = vmatprep.mubr.msk.bf16.mxu0 %vm716_vm0, %v4873_v43 }
 0x128   : > { %v1366_v52 = vadd.f32 %v5264_v25, %v1327_v51 }
 0x129   : > { %v879_v53 = vpop.f32.mrb[16].mxu0 }
 0x12a   : > { %1110 = vst [vmem:[#allocation2 + $0x40] sm:$0xff] %v879_v53  ;;  %v881_v54 = vpop.f32.mrb[17].mxu0  ;;  %v1398_v56 = vmax.f32 %v1366_v52, 0.0 }
 0x12b   : > { %v1172_v57 = vld [vmem:[#allocation2 + $0x30] ss:$2 sm:$0xff]  ;;  %v1236_v58 = vld [vmem:[#allocation2 + $0x31] ss:$2 sm:$0xff]  ;;  %v882_v59 = vpop.f32.mrb[18].mxu0  ;;  %v1493_v3 = vld [vmem:[#allocation3 + $0x1] sm:$0xff] }
 0x12c   : > { %v1296_v60 = vadd.f32 %v1236_v58, %v1172_v57  ;;  %1111 = vst [vmem:[#allocation2 + $0x48] sm:$0xff] %v882_v59  ;;  %v884_v61 = vpop.f32.mrb[19].mxu0  ;;  %1430 = vst [vmem:[#allocation3 + $0x10] sm:$0xff] %v1398_v56 }
 0x12e   : > { %v1328_v62 = vmul.f32 0.5, %v1296_v60  ;;  %1094 = vmatmul.mubr.bf16.gmra.mrb[124].mxu0 %v4875_v55 }
 0x130   : > { %v1367_v63 = vadd.f32 %v5264_v25, %v1328_v62 }
 0x131   : > { %v887_v0 = vpop.f32.mrb[20].mxu0 }
 0x132   : > { %v1399_v1 = vmax.f32 %v1367_v63, 0.0  ;;  %1112 = vst [vmem:[#allocation2 + $0x50] sm:$0xff] %v887_v0  ;;  %v889_v2 = vpop.f32.mrb[21].mxu0 }
 0x133   : > { %v1174_v4 = vld [vmem:[#allocation2 + $0x40] ss:$2 sm:$0xff]  ;;  %v1238_v5 = vld [vmem:[#allocation2 + $0x41] ss:$2 sm:$0xff]  ;;  %v890_v6 = vpop.f32.mrb[22].mxu0 }
 0x134   : > { %v1494_v7 = vld [vmem:[#allocation3 + $0x9] sm:$0xff]  ;;  %1431 = vst [vmem:[#allocation3 + $0x18] sm:$0xff] %v1399_v1  ;;  %v1297_v8 = vadd.f32 %v1238_v5, %v1174_v4  ;;  %1113 = vst [vmem:[#allocation2 + $0x58] sm:$0xff] %v890_v6  ;;  %v892_v9 = vpop.f32.mrb[23].mxu0  ;;  %v5280_v11 = vpack.c.bf16 %v1399_v1, %v1398_v56 }
 0x135   : > { %v1525_v10 = vpack.c.bf16 %v1494_v7, %v1493_v3 }
 0x136   : > { %v1329_v12 = vmul.f32 0.5, %v1297_v8 }
 0x137   : > { %4272 = vmatprep.mubr.bf16.mxu1 %v1525_v10 }
 0x138   : > { %v1368_v13 = vadd.f32 %v5264_v25, %v1329_v12 }
 0x139   : > { %v895_v14 = vpop.f32.mrb[24].mxu0 }
 0x13a   : > { %v1400_v15 = vmax.f32 %v1368_v13, 0.0  ;;  %1114 = vst [vmem:[#allocation2 + $0x60] sm:$0xff] %v895_v14  ;;  %v897_v16 = vpop.f32.mrb[25].mxu0 }
 0x13b   : > { %v1176_v17 = vld [vmem:[#allocation2 + $0x50] ss:$2 sm:$0xff]  ;;  %v1240_v18 = vld [vmem:[#allocation2 + $0x51] ss:$2 sm:$0xff]  ;;  %v898_v19 = vpop.f32.mrb[26].mxu0 }
 0x13c   : > { %1432 = vst [vmem:[#allocation3 + $0x20] sm:$0xff] %v1400_v15  ;;  %v1298_v20 = vadd.f32 %v1240_v18, %v1176_v17  ;;  %1115 = vst [vmem:[#allocation2 + $0x68] sm:$0xff] %v898_v19  ;;  %v900_v21 = vpop.f32.mrb[27].mxu0  ;;  %v1495_v28 = vld [vmem:[#allocation3 + $0x11] sm:$0xff] }
 0x13e   : > { %v1330_v22 = vmul.f32 0.5, %v1298_v20 }
 0x140   : > { %v1369_v23 = vadd.f32 %v5264_v25, %v1330_v22 }
 0x141   : > { %v903_v24 = vpop.f32.mrb[28].mxu0 }
 0x142   : > { %v1401_v26 = vmax.f32 %v1369_v23, 0.0  ;;  %1116 = vst [vmem:[#allocation2 + $0x70] sm:$0xff] %v903_v24  ;;  %v905_v27 = vpop.f32.mrb[29].mxu0 }
 0x143   : > { %v1178_v29 = vld [vmem:[#allocation2 + $0x60] ss:$2 sm:$0xff]  ;;  %v1242_v30 = vld [vmem:[#allocation2 + $0x61] ss:$2 sm:$0xff]  ;;  %v906_v31 = vpop.f32.mrb[30].mxu0 }
 0x144   : > { %v1496_v32 = vld [vmem:[#allocation3 + $0x19] sm:$0xff]  ;;  %1433 = vst [vmem:[#allocation3 + $0x28] sm:$0xff] %v1401_v26  ;;  %v1299_v33 = vadd.f32 %v1242_v30, %v1178_v29  ;;  %1117 = vst [vmem:[#allocation2 + $0x78] sm:$0xff] %v906_v31  ;;  %v908_v34 = vpop.f32.mrb[31].mxu0  ;;  %v5284_v36 = vpack.c.bf16 %v1401_v26, %v1400_v15 }
 0x145   : > { %v1526_v35 = vpack.c.bf16 %v1496_v32, %v1495_v28 }
 0x146   : > { %v1331_v37 = vmul.f32 0.5, %v1299_v33 }
 0x147   : > { %4273 = vmatmul.mubr.bf16.vlgmr.msra.gmra.mrb[0].mxu1 %v1526_v35 }
 0x148   : > { %v1370_v38 = vadd.f32 %v5264_v25, %v1331_v37 }
 0x149   : > { %v911_v39 = vpop.f32.mrb[32].mxu0 }
 0x14a   : > { %v1402_v40 = vmax.f32 %v1370_v38, 0.0  ;;  %1118 = vst [vmem:[#allocation2 + $0x80] sm:$0xff] %v911_v39  ;;  %v913_v41 = vpop.f32.mrb[33].mxu0 }
 0x14b   : > { %v1180_v42 = vld [vmem:[#allocation2 + $0x70] ss:$2 sm:$0xff]  ;;  %v1244_v43 = vld [vmem:[#allocation2 + $0x71] ss:$2 sm:$0xff]  ;;  %v914_v44 = vpop.f32.mrb[34].mxu0  ;;  %v1497_v53 = vld [vmem:[#allocation3 + $0x21] sm:$0xff] }
 0x14c   : > { %1434 = vst [vmem:[#allocation3 + $0x30] sm:$0xff] %v1402_v40  ;;  %v1300_v45 = vadd.f32 %v1244_v43, %v1180_v42  ;;  %1119 = vst [vmem:[#allocation2 + $0x88] sm:$0xff] %v914_v44  ;;  %v916_v46 = vpop.f32.mrb[35].mxu0 }
 0x14e   : > { %v1332_v47 = vmul.f32 0.5, %v1300_v45 }
 0x150   : > { %v1371_v48 = vadd.f32 %v5264_v25, %v1332_v47 }
 0x151   : > { %v919_v49 = vpop.f32.mrb[36].mxu0 }
 0x152   : > { %v1403_v51 = vmax.f32 %v1371_v48, 0.0  ;;  %1120 = vst [vmem:[#allocation2 + $0x90] sm:$0xff] %v919_v49  ;;  %v921_v52 = vpop.f32.mrb[37].mxu0  ;;  %v4882_v48 = vld [vmem:[%s5692_s3] sm:$0xff]  }
 0x153   : > { %v1182_v54 = vld [vmem:[#allocation2 + $0x80] ss:$2 sm:$0xff]  ;;  %v1246_v55 = vld [vmem:[#allocation2 + $0x81] ss:$2 sm:$0xff]  ;;  %v922_v56 = vpop.f32.mrb[38].mxu0  ;;  %4304 = vmatprep.subr.bf16.mxu1 %v4882_v48 }
 0x154   : > { %v1498_v57 = vld [vmem:[#allocation3 + $0x29] sm:$0xff]  ;;  %1435 = vst [vmem:[#allocation3 + $0x38] sm:$0xff] %v1403_v51  ;;  %v1301_v58 = vadd.f32 %v1246_v55, %v1182_v54  ;;  %1121 = vst [vmem:[#allocation2 + $0x98] sm:$0xff] %v922_v56  ;;  %v924_v59 = vpop.f32.mrb[39].mxu0  ;;  %v5288_v61 = vpack.c.bf16 %v1403_v51, %v1402_v40  ;;  %4305 = vmatpush3.bf16.msra.mxu1 %v4882_v48 }
 0x155   : > { %v1527_v60 = vpack.c.bf16 %v1498_v57, %v1497_v53  ;;  %v4888_v48 = vld [vmem:[%s5692_s3 + $0x30] sm:$0xff]  }
 0x156   : > { %v1333_v62 = vmul.f32 0.5, %v1301_v58 }
 0x157   : > { %4276 = vmatprep.mubr.bf16.mxu1 %v1527_v60 }
 0x158   : > { %v1372_v63 = vadd.f32 %v5264_v25, %v1333_v62  ;;  %v4883_v62 = vld [vmem:[%s5692_s3 + $0x8] sm:$0xff]  }
 0x159   : > { %v927_v0 = vpop.f32.mrb[40].mxu0  ;;  %4306 = vmatprep.subr.bf16.mxu1 %v4883_v62 }
 0x15a   : > { %v1404_v1 = vmax.f32 %v1372_v63, 0.0  ;;  %1122 = vst [vmem:[#allocation2 + $0xa0] sm:$0xff] %v927_v0  ;;  %v929_v2 = vpop.f32.mrb[41].mxu0  ;;  %4307 = vmatpush3.bf16.msra.mxu1 %v4883_v62 }
 0x15b   : > { %v1184_v3 = vld [vmem:[#allocation2 + $0x90] ss:$2 sm:$0xff]  ;;  %v1248_v4 = vld [vmem:[#allocation2 + $0x91] ss:$2 sm:$0xff]  ;;  %v930_v5 = vpop.f32.mrb[42].mxu0 }
 0x15c   : > { %1436 = vst [vmem:[#allocation3 + $0x40] sm:$0xff] %v1404_v1  ;;  %v1302_v6 = vadd.f32 %v1248_v4, %v1184_v3  ;;  %1123 = vst [vmem:[#allocation2 + $0xa8] sm:$0xff] %v930_v5  ;;  %v932_v7 = vpop.f32.mrb[43].mxu0  ;;  %v1499_v14 = vld [vmem:[#allocation3 + $0x31] sm:$0xff] }
 0x15e   : > { %v1334_v8 = vmul.f32 0.5, %v1302_v6 }
 0x160   : > { %v1373_v9 = vadd.f32 %v5264_v25, %v1334_v8 }
 0x161   : > { %v935_v10 = vpop.f32.mrb[44].mxu0 }
 0x162   : > { %v1405_v12 = vmax.f32 %v1373_v9, 0.0  ;;  %1124 = vst [vmem:[#allocation2 + $0xb0] sm:$0xff] %v935_v10  ;;  %v937_v13 = vpop.f32.mrb[45].mxu0 }
 0x163   : > { %v1186_v15 = vld [vmem:[#allocation2 + $0xa0] ss:$2 sm:$0xff]  ;;  %v1250_v16 = vld [vmem:[#allocation2 + $0xa1] ss:$2 sm:$0xff]  ;;  %v938_v17 = vpop.f32.mrb[46].mxu0  ;;  %v4884_v13 = vld [vmem:[%s5692_s3 + $0x10] sm:$0xff]  }
 0x164   : > { %v1500_v18 = vld [vmem:[#allocation3 + $0x39] sm:$0xff]  ;;  %1437 = vst [vmem:[#allocation3 + $0x48] sm:$0xff] %v1405_v12  ;;  %v1303_v19 = vadd.f32 %v1250_v16, %v1186_v15  ;;  %1125 = vst [vmem:[#allocation2 + $0xb8] sm:$0xff] %v938_v17  ;;  %v940_v20 = vpop.f32.mrb[47].mxu0  ;;  %v5292_v22 = vpack.c.bf16 %v1405_v12, %v1404_v1  ;;  %4308 = vmatprep.subr.bf16.mxu1 %v4884_v13 }
 0x165   : > { %v1528_v21 = vpack.c.bf16 %v1500_v18, %v1499_v14  ;;  %4309 = vmatpush3.bf16.msra.mxu1 %v4884_v13 }
 0x166   : > { %v1335_v23 = vmul.f32 0.5, %v1303_v19 }
 0x167   : > { %4277 = vmatmul.mubr.bf16.gmra.mrb[4].mxu1 %v1528_v21 }
 0x168   : > { %v1374_v24 = vadd.f32 %v5264_v25, %v1335_v23 }
 0x169   : > { %v943_v26 = vpop.f32.mrb[48].mxu0 }
 0x16a   : > { %v1406_v27 = vmax.f32 %v1374_v24, 0.0  ;;  %1126 = vst [vmem:[#allocation2 + $0xc0] sm:$0xff] %v943_v26  ;;  %v945_v28 = vpop.f32.mrb[49].mxu0 }
 0x16b   : > { %v1188_v29 = vld [vmem:[#allocation2 + $0xb0] ss:$2 sm:$0xff]  ;;  %v1252_v30 = vld [vmem:[#allocation2 + $0xb1] ss:$2 sm:$0xff]  ;;  %v946_v31 = vpop.f32.mrb[50].mxu0  ;;  %v1501_v40 = vld [vmem:[#allocation3 + $0x41] sm:$0xff] }
 0x16c   : > { %1438 = vst [vmem:[#allocation3 + $0x50] sm:$0xff] %v1406_v27  ;;  %v1304_v32 = vadd.f32 %v1252_v30, %v1188_v29  ;;  %1127 = vst [vmem:[#allocation2 + $0xc8] sm:$0xff] %v946_v31  ;;  %v948_v33 = vpop.f32.mrb[51].mxu0 }
 0x16e   : > { %v1336_v34 = vmul.f32 0.5, %v1304_v32 }
 0x170   : > { %v1375_v35 = vadd.f32 %v5264_v25, %v1336_v34 }
 0x171   : > { %v951_v37 = vpop.f32.mrb[52].mxu0 }
 0x172   : > { %v1407_v38 = vmax.f32 %v1375_v35, 0.0  ;;  %1128 = vst [vmem:[#allocation2 + $0xd0] sm:$0xff] %v951_v37  ;;  %v953_v39 = vpop.f32.mrb[53].mxu0 }
 0x173   : > { %v1190_v41 = vld [vmem:[#allocation2 + $0xc0] ss:$2 sm:$0xff]  ;;  %v1254_v42 = vld [vmem:[#allocation2 + $0xc1] ss:$2 sm:$0xff]  ;;  %v954_v43 = vpop.f32.mrb[54].mxu0 }
 0x174   : > { %v1502_v44 = vld [vmem:[#allocation3 + $0x49] sm:$0xff]  ;;  %1439 = vst [vmem:[#allocation3 + $0x58] sm:$0xff] %v1407_v38  ;;  %v1305_v45 = vadd.f32 %v1254_v42, %v1190_v41  ;;  %1129 = vst [vmem:[#allocation2 + $0xd8] sm:$0xff] %v954_v43  ;;  %v956_v46 = vpop.f32.mrb[55].mxu0  ;;  %v5299_v49 = vpack.c.bf16 %v1407_v38, %v1406_v27  ;;  %v4885_v27 = vld [vmem:[%s5692_s3 + $0x18] sm:$0xff]  }
 0x175   : > { %v1529_v47 = vpack.c.bf16 %v1502_v44, %v1501_v40  ;;  %4310 = vmatprep.subr.bf16.mxu1 %v4885_v27  ;;  %v4886_v42 = vld [vmem:[%s5692_s3 + $0x20] sm:$0xff]   ;;  %v4887_v43 = vld [vmem:[%s5692_s3 + $0x28] sm:$0xff]  }
 0x176   : > { %v1337_v51 = vmul.f32 0.5, %v1305_v45  ;;  %4311 = vmatpush3.bf16.msra.mxu1 %v4885_v27  ;;  %v5020_v45 = vmov 0.0  }
 0x177   : > { %4280 = vmatprep.mubr.bf16.mxu1 %v1529_v47  ;;  %1460 = vst [vmem:[#allocation3 + $0x100] sm:$0xff] %v5020_v45  ;;  %4496 = vmatprep.subr.bf16.mxu0 %v5020_v45 }
 0x178   : > { %v1376_v52 = vadd.f32 %v5264_v25, %v1337_v51  ;;  %4312 = vmatprep.subr.bf16.mxu1 %v4886_v42 }
 0x179   : > { %v959_v53 = vpop.f32.mrb[56].mxu0 }
 0x17a   : > { %v1408_v54 = vmax.f32 %v1376_v52, 0.0  ;;  %1130 = vst [vmem:[#allocation2 + $0xe0] sm:$0xff] %v959_v53  ;;  %v961_v55 = vpop.f32.mrb[57].mxu0  ;;  %4313 = vmatpush3.bf16.msra.mxu1 %v4886_v42 }
 0x17b   : > { %v1192_v56 = vld [vmem:[#allocation2 + $0xd0] ss:$2 sm:$0xff]  ;;  %v1256_v57 = vld [vmem:[#allocation2 + $0xd1] ss:$2 sm:$0xff]  ;;  %v962_v58 = vpop.f32.mrb[58].mxu0  ;;  %4314 = vmatprep.subr.bf16.mxu1 %v4887_v43 }
 0x17c   : > { %1440 = vst [vmem:[#allocation3 + $0x60] sm:$0xff] %v1408_v54  ;;  %v1306_v59 = vadd.f32 %v1256_v57, %v1192_v56  ;;  %1131 = vst [vmem:[#allocation2 + $0xe8] sm:$0xff] %v962_v58  ;;  %v964_v60 = vpop.f32.mrb[59].mxu0  ;;  %v1503_v4 = vld [vmem:[#allocation3 + $0x51] sm:$0xff] }
 0x17e   : > { %v1338_v63 = vmul.f32 0.5, %v1306_v59  ;;  %4315 = vmatpush3.bf16.msra.mxu1 %v4887_v43  ;;  %v4889_v59 = vld [vmem:[%s5692_s3 + $0x38] sm:$0xff]  }
 0x17f   : > { %4316 = vmatprep.subr.bf16.mxu1 %v4888_v48 }
 0x180   : > { %v1377_v0 = vadd.f32 %v5264_v25, %v1338_v63  ;;  %v5337_v63 = vld [vmem:[%s5692_s3 + $0x80] sm:$0xff]  }
 0x181   : > { %v967_v1 = vpop.f32.mrb[60].mxu0 }
 0x182   : > { %v1409_v2 = vmax.f32 %v1377_v0, 0.0  ;;  %1132 = vst [vmem:[#allocation2 + $0xf0] sm:$0xff] %v967_v1  ;;  %v969_v3 = vpop.f32.mrb[61].mxu0  ;;  %4317 = vmatpush3.bf16.msra.mxu1 %v4888_v48 }
 0x183   : > { %v1194_v5 = vld [vmem:[#allocation2 + $0xe0] ss:$2 sm:$0xff]  ;;  %v1258_v6 = vld [vmem:[#allocation2 + $0xe1] ss:$2 sm:$0xff]  ;;  %v970_v7 = vpop.f32.mrb[62].mxu0  ;;  %4318 = vmatprep.subr.bf16.mxu1 %v4889_v59 }
 0x184   : > { %v1504_v8 = vld [vmem:[#allocation3 + $0x59] sm:$0xff]  ;;  %1441 = vst [vmem:[#allocation3 + $0x68] sm:$0xff] %v1409_v2  ;;  %v1307_v9 = vadd.f32 %v1258_v6, %v1194_v5  ;;  %1133 = vst [vmem:[#allocation2 + $0xf8] sm:$0xff] %v970_v7  ;;  %v972_v10 = vpop.f32.mrb[63].mxu0  ;;  %v5309_v14 = vpack.c.bf16 %v1409_v2, %v1408_v54 }
 0x185   : > { %v1530_v12 = vpack.c.bf16 %v1504_v8, %v1503_v4 }
 0x186   : > { %v1339_v15 = vmul.f32 0.5, %v1307_v9  ;;  %4319 = vmatpush3.bf16.msra.mxu1 %v4889_v59 }
 0x187   : > { %4281 = vmatmul.mubr.bf16.gmra.mrb[8].mxu1 %v1530_v12  ;;  %4352 = vmatprep.subr.bf16.mxu1 %v5337_v63 }
 0x188   : > { %v1378_v16 = vadd.f32 %v5264_v25, %v1339_v15 }
 0x189   : > { %v975_v17 = vpop.f32.mrb[64].mxu0 }
 0x18a   : > { %v1410_v18 = vmax.f32 %v1378_v16, 0.0  ;;  %1134 = vst [vmem:[#allocation2 + $0x100] sm:$0xff] %v975_v17  ;;  %v977_v19 = vpop.f32.mrb[65].mxu0 }
 0x18b   : > { %v1196_v20 = vld [vmem:[#allocation2 + $0xf0] ss:$2 sm:$0xff]  ;;  %v1260_v21 = vld [vmem:[#allocation2 + $0xf1] ss:$2 sm:$0xff]  ;;  %v978_v23 = vpop.f32.mrb[66].mxu0  ;;  %v1505_v33 = vld [vmem:[#allocation3 + $0x61] sm:$0xff] }
 0x18c   : > { %1442 = vst [vmem:[#allocation3 + $0x70] sm:$0xff] %v1410_v18  ;;  %v1308_v24 = vadd.f32 %v1260_v21, %v1196_v20  ;;  %1135 = vst [vmem:[#allocation2 + $0x108] sm:$0xff] %v978_v23  ;;  %v980_v26 = vpop.f32.mrb[67].mxu0 }
 0x18e   : > { %v1340_v28 = vmul.f32 0.5, %v1308_v24 }
 0x190   : > { %v1379_v29 = vadd.f32 %v5264_v25, %v1340_v28 }
 0x191   : > { %v983_v30 = vpop.f32.mrb[68].mxu0 }
 0x192   : > { %v1411_v31 = vmax.f32 %v1379_v29, 0.0  ;;  %1136 = vst [vmem:[#allocation2 + $0x110] sm:$0xff] %v983_v30  ;;  %v985_v32 = vpop.f32.mrb[69].mxu0 }
 0x193   : > { %v1198_v34 = vld [vmem:[#allocation2 + $0x100] ss:$2 sm:$0xff]  ;;  %v1262_v35 = vld [vmem:[#allocation2 + $0x101] ss:$2 sm:$0xff]  ;;  %v986_v37 = vpop.f32.mrb[70].mxu0 }
 0x194   : > { %v1506_v38 = vld [vmem:[#allocation3 + $0x69] sm:$0xff]  ;;  %1443 = vst [vmem:[#allocation3 + $0x78] sm:$0xff] %v1411_v31  ;;  %v1309_v39 = vadd.f32 %v1262_v35, %v1198_v34  ;;  %1137 = vst [vmem:[#allocation2 + $0x118] sm:$0xff] %v986_v37  ;;  %v988_v40 = vpop.f32.mrb[71].mxu0  ;;  %v5322_v44 = vpack.c.bf16 %v1411_v31, %v1410_v18 }
 0x195   : > { %v1531_v41 = vpack.c.bf16 %v1506_v38, %v1505_v33 }
 0x196   : > { %v1341_v46 = vmul.f32 0.5, %v1309_v39 }
 0x197   : > { %4284 = vmatprep.mubr.bf16.mxu1 %v1531_v41 }
 0x198   : > { %v1380_v47 = vadd.f32 %v5264_v25, %v1341_v46 }
 0x199   : > { %v991_v51 = vpop.f32.mrb[72].mxu0 }
 0x19a   : > { %v1412_v52 = vmax.f32 %v1380_v47, 0.0  ;;  %1138 = vst [vmem:[#allocation2 + $0x120] sm:$0xff] %v991_v51  ;;  %v993_v53 = vpop.f32.mrb[73].mxu0 }
 0x19b   : > { %v1200_v54 = vld [vmem:[#allocation2 + $0x110] ss:$2 sm:$0xff]  ;;  %v1264_v55 = vld [vmem:[#allocation2 + $0x111] ss:$2 sm:$0xff]  ;;  %v994_v56 = vpop.f32.mrb[74].mxu0 }
 0x19c   : > { %1444 = vst [vmem:[#allocation3 + $0x80] sm:$0xff] %v1412_v52  ;;  %v1310_v57 = vadd.f32 %v1264_v55, %v1200_v54  ;;  %1139 = vst [vmem:[#allocation2 + $0x128] sm:$0xff] %v994_v56  ;;  %v996_v58 = vpop.f32.mrb[75].mxu0  ;;  %v1507_v3 = vld [vmem:[#allocation3 + $0x71] sm:$0xff] }
 0x19e   : > { %v1342_v60 = vmul.f32 0.5, %v1310_v57 }
 0x1a0   : > { %v1381_v62 = vadd.f32 %v5264_v25, %v1342_v60 }
 0x1a1   : > { %v999_v0 = vpop.f32.mrb[76].mxu0 }
 0x1a2   : > { %v1413_v1 = vmax.f32 %v1381_v62, 0.0  ;;  %1140 = vst [vmem:[#allocation2 + $0x130] sm:$0xff] %v999_v0  ;;  %v1001_v2 = vpop.f32.mrb[77].mxu0 }
 0x1a3   : > { %v1202_v4 = vld [vmem:[#allocation2 + $0x120] ss:$2 sm:$0xff]  ;;  %v1266_v5 = vld [vmem:[#allocation2 + $0x121] ss:$2 sm:$0xff]  ;;  %v1002_v6 = vpop.f32.mrb[78].mxu0 }
 0x1a4   : > { %v1508_v7 = vld [vmem:[#allocation3 + $0x79] sm:$0xff]  ;;  %1445 = vst [vmem:[#allocation3 + $0x88] sm:$0xff] %v1413_v1  ;;  %v1311_v8 = vadd.f32 %v1266_v5, %v1202_v4  ;;  %1141 = vst [vmem:[#allocation2 + $0x138] sm:$0xff] %v1002_v6  ;;  %v1004_v9 = vpop.f32.mrb[79].mxu0  ;;  %v5340_v12 = vpack.c.bf16 %v1413_v1, %v1412_v52 }
 0x1a5   : > { %v1532_v10 = vpack.c.bf16 %v1508_v7, %v1507_v3 }
 0x1a6   : > { %v1343_v13 = vmul.f32 0.5, %v1311_v8 }
 0x1a7   : > { %4285 = vmatmul.mubr.bf16.gmra.mrb[12].mxu1 %v1532_v10 }
 0x1a8   : > { %v1382_v15 = vadd.f32 %v5264_v25, %v1343_v13 }
 0x1a9   : > { %v1007_v16 = vpop.f32.mrb[80].mxu0 }
 0x1aa   : > { %v1414_v17 = vmax.f32 %v1382_v15, 0.0  ;;  %1142 = vst [vmem:[#allocation2 + $0x140] sm:$0xff] %v1007_v16  ;;  %v1009_v18 = vpop.f32.mrb[81].mxu0 }
 0x1ab   : > { %v1204_v19 = vld [vmem:[#allocation2 + $0x130] ss:$2 sm:$0xff]  ;;  %v1268_v20 = vld [vmem:[#allocation2 + $0x131] ss:$2 sm:$0xff]  ;;  %v1010_v21 = vpop.f32.mrb[82].mxu0  ;;  %v1509_v31 = vld [vmem:[#allocation3 + $0x81] sm:$0xff] }
 0x1ac   : > { %1446 = vst [vmem:[#allocation3 + $0x90] sm:$0xff] %v1414_v17  ;;  %v1312_v23 = vadd.f32 %v1268_v20, %v1204_v19  ;;  %1143 = vst [vmem:[#allocation2 + $0x148] sm:$0xff] %v1010_v21  ;;  %v1012_v24 = vpop.f32.mrb[83].mxu0 }
 0x1ae   : > { %v1344_v26 = vmul.f32 0.5, %v1312_v23 }
 0x1b0   : > { %v1383_v27 = vadd.f32 %v5264_v25, %v1344_v26 }
 0x1b1   : > { %v1015_v28 = vpop.f32.mrb[84].mxu0 }
 0x1b2   : > { %v1415_v29 = vmax.f32 %v1383_v27, 0.0  ;;  %1144 = vst [vmem:[#allocation2 + $0x150] sm:$0xff] %v1015_v28  ;;  %v1017_v30 = vpop.f32.mrb[85].mxu0 }
 0x1b3   : > { %v1206_v32 = vld [vmem:[#allocation2 + $0x140] ss:$2 sm:$0xff]  ;;  %v1270_v33 = vld [vmem:[#allocation2 + $0x141] ss:$2 sm:$0xff]  ;;  %v1018_v34 = vpop.f32.mrb[86].mxu0 }
 0x1b4   : > { %v1510_v35 = vld [vmem:[#allocation3 + $0x89] sm:$0xff]  ;;  %1447 = vst [vmem:[#allocation3 + $0x98] sm:$0xff] %v1415_v29  ;;  %v1313_v37 = vadd.f32 %v1270_v33, %v1206_v32  ;;  %1145 = vst [vmem:[#allocation2 + $0x158] sm:$0xff] %v1018_v34  ;;  %v1020_v38 = vpop.f32.mrb[87].mxu0  ;;  %v5344_v40 = vpack.c.bf16 %v1415_v29, %v1414_v17 }
 0x1b5   : > { %v1533_v39 = vpack.c.bf16 %v1510_v35, %v1509_v31 }
 0x1b6   : > { %v1345_v41 = vmul.f32 0.5, %v1313_v37 }
 0x1b7   : > { %4288 = vmatprep.mubr.bf16.mxu1 %v1533_v39 }
 0x1b8   : > { %v1384_v42 = vadd.f32 %v5264_v25, %v1345_v41 }
 0x1b9   : > { %v1023_v43 = vpop.f32.mrb[88].mxu0 }
 0x1ba   : > { %v1416_v46 = vmax.f32 %v1384_v42, 0.0  ;;  %1146 = vst [vmem:[#allocation2 + $0x160] sm:$0xff] %v1023_v43  ;;  %v1025_v47 = vpop.f32.mrb[89].mxu0 }
 0x1bb   : > { %v1208_v48 = vld [vmem:[#allocation2 + $0x150] ss:$2 sm:$0xff]  ;;  %v1272_v51 = vld [vmem:[#allocation2 + $0x151] ss:$2 sm:$0xff]  ;;  %v1026_v52 = vpop.f32.mrb[90].mxu0 }
 0x1bc   : > { %1448 = vst [vmem:[#allocation3 + $0xa0] sm:$0xff] %v1416_v46  ;;  %v1314_v53 = vadd.f32 %v1272_v51, %v1208_v48  ;;  %1147 = vst [vmem:[#allocation2 + $0x168] sm:$0xff] %v1026_v52  ;;  %v1028_v54 = vpop.f32.mrb[91].mxu0  ;;  %v1511_v60 = vld [vmem:[#allocation3 + $0x91] sm:$0xff] }
 0x1be   : > { %v1346_v55 = vmul.f32 0.5, %v1314_v53 }
 0x1c0   : > { %v1385_v56 = vadd.f32 %v5264_v25, %v1346_v55 }
 0x1c1   : > { %v1031_v57 = vpop.f32.mrb[92].mxu0 }
 0x1c2   : > { %v1417_v58 = vmax.f32 %v1385_v56, 0.0  ;;  %1148 = vst [vmem:[#allocation2 + $0x170] sm:$0xff] %v1031_v57  ;;  %v1033_v59 = vpop.f32.mrb[93].mxu0 }
 0x1c3   : > { %v1210_v62 = vld [vmem:[#allocation2 + $0x160] ss:$2 sm:$0xff]  ;;  %v1274_v0 = vld [vmem:[#allocation2 + $0x161] ss:$2 sm:$0xff]  ;;  %v1034_v1 = vpop.f32.mrb[94].mxu0 }
 0x1c4   : > { %v1512_v2 = vld [vmem:[#allocation3 + $0x99] sm:$0xff]  ;;  %1449 = vst [vmem:[#allocation3 + $0xa8] sm:$0xff] %v1417_v58  ;;  %v1315_v3 = vadd.f32 %v1274_v0, %v1210_v62  ;;  %1149 = vst [vmem:[#allocation2 + $0x178] sm:$0xff] %v1034_v1  ;;  %v1036_v4 = vpop.f32.mrb[95].mxu0  ;;  %v5348_v6 = vpack.c.bf16 %v1417_v58, %v1416_v46 }
 0x1c5   : > { %v1534_v5 = vpack.c.bf16 %v1512_v2, %v1511_v60 }
 0x1c6   : > { %v1347_v7 = vmul.f32 0.5, %v1315_v3 }
 0x1c7   : > { %4289 = vmatmul.mubr.bf16.gmra.mrb[16].mxu1 %v1534_v5 }
 0x1c8   : > { %v1386_v8 = vadd.f32 %v5264_v25, %v1347_v7 }
 0x1c9   : > { %v1039_v9 = vpop.f32.mrb[96].mxu0 }
 0x1ca   : > { %v1418_v10 = vmax.f32 %v1386_v8, 0.0  ;;  %1150 = vst [vmem:[#allocation2 + $0x180] sm:$0xff] %v1039_v9  ;;  %v1041_v13 = vpop.f32.mrb[97].mxu0 }
 0x1cb   : > { %v1212_v15 = vld [vmem:[#allocation2 + $0x170] ss:$2 sm:$0xff]  ;;  %v1276_v16 = vld [vmem:[#allocation2 + $0x171] ss:$2 sm:$0xff]  ;;  %v1042_v17 = vpop.f32.mrb[98].mxu0  ;;  %v1513_v27 = vld [vmem:[#allocation3 + $0xa1] sm:$0xff] }
 0x1cc   : > { %1450 = vst [vmem:[#allocation3 + $0xb0] sm:$0xff] %v1418_v10  ;;  %v1316_v18 = vadd.f32 %v1276_v16, %v1212_v15  ;;  %1151 = vst [vmem:[#allocation2 + $0x188] sm:$0xff] %v1042_v17  ;;  %v1044_v19 = vpop.f32.mrb[99].mxu0 }
 0x1ce   : > { %v1348_v20 = vmul.f32 0.5, %v1316_v18 }
 0x1d0   : > { %v1387_v21 = vadd.f32 %v5264_v25, %v1348_v20 }
 0x1d1   : > { %v1047_v23 = vpop.f32.mrb[100].mxu0 }
 0x1d2   : > { %v1419_v24 = vmax.f32 %v1387_v21, 0.0  ;;  %1152 = vst [vmem:[#allocation2 + $0x190] sm:$0xff] %v1047_v23  ;;  %v1049_v26 = vpop.f32.mrb[101].mxu0 }
 0x1d3   : > { %v1214_v28 = vld [vmem:[#allocation2 + $0x180] ss:$2 sm:$0xff]  ;;  %v1278_v29 = vld [vmem:[#allocation2 + $0x181] ss:$2 sm:$0xff]  ;;  %v1050_v30 = vpop.f32.mrb[102].mxu0 }
 0x1d4   : > { %v1514_v31 = vld [vmem:[#allocation3 + $0xa9] sm:$0xff]  ;;  %1451 = vst [vmem:[#allocation3 + $0xb8] sm:$0xff] %v1419_v24  ;;  %v1317_v32 = vadd.f32 %v1278_v29, %v1214_v28  ;;  %1153 = vst [vmem:[#allocation2 + $0x198] sm:$0xff] %v1050_v30  ;;  %v1052_v33 = vpop.f32.mrb[103].mxu0  ;;  %v5352_v35 = vpack.c.bf16 %v1419_v24, %v1418_v10 }
 0x1d5   : > { %v1535_v34 = vpack.c.bf16 %v1514_v31, %v1513_v27 }
 0x1d6   : > { %v1349_v37 = vmul.f32 0.5, %v1317_v32 }
 0x1d7   : > { %4292 = vmatprep.mubr.bf16.mxu1 %v1535_v34 }
 0x1d8   : > { %v1388_v38 = vadd.f32 %v5264_v25, %v1349_v37 }
 0x1d9   : > { %v1055_v39 = vpop.f32.mrb[104].mxu0 }
 0x1da   : > { %v1420_v41 = vmax.f32 %v1388_v38, 0.0  ;;  %1154 = vst [vmem:[#allocation2 + $0x1a0] sm:$0xff] %v1055_v39  ;;  %v1057_v42 = vpop.f32.mrb[105].mxu0 }
 0x1db   : > { %v1216_v43 = vld [vmem:[#allocation2 + $0x190] ss:$2 sm:$0xff]  ;;  %v1280_v46 = vld [vmem:[#allocation2 + $0x191] ss:$2 sm:$0xff]  ;;  %v1058_v47 = vpop.f32.mrb[106].mxu0 }
 0x1dc   : > { %1452 = vst [vmem:[#allocation3 + $0xc0] sm:$0xff] %v1420_v41  ;;  %v1318_v48 = vadd.f32 %v1280_v46, %v1216_v43  ;;  %1155 = vst [vmem:[#allocation2 + $0x1a8] sm:$0xff] %v1058_v47  ;;  %v1060_v51 = vpop.f32.mrb[107].mxu0  ;;  %v1515_v57 = vld [vmem:[#allocation3 + $0xb1] sm:$0xff] }
 0x1de   : > { %v1350_v52 = vmul.f32 0.5, %v1318_v48 }
 0x1e0   : > { %v1389_v53 = vadd.f32 %v5264_v25, %v1350_v52 }
 0x1e1   : > { %v1063_v54 = vpop.f32.mrb[108].mxu0 }
 0x1e2   : > { %v1421_v55 = vmax.f32 %v1389_v53, 0.0  ;;  %1156 = vst [vmem:[#allocation2 + $0x1b0] sm:$0xff] %v1063_v54  ;;  %v1065_v56 = vpop.f32.mrb[109].mxu0 }
 0x1e3   : > { %v1218_v58 = vld [vmem:[#allocation2 + $0x1a0] ss:$2 sm:$0xff]  ;;  %v1282_v59 = vld [vmem:[#allocation2 + $0x1a1] ss:$2 sm:$0xff]  ;;  %v1066_v60 = vpop.f32.mrb[110].mxu0 }
 0x1e4   : > { %v1516_v62 = vld [vmem:[#allocation3 + $0xb9] sm:$0xff]  ;;  %1453 = vst [vmem:[#allocation3 + $0xc8] sm:$0xff] %v1421_v55  ;;  %v1319_v0 = vadd.f32 %v1282_v59, %v1218_v58  ;;  %1157 = vst [vmem:[#allocation2 + $0x1b8] sm:$0xff] %v1066_v60  ;;  %v1068_v1 = vpop.f32.mrb[111].mxu0  ;;  %v5356_v3 = vpack.c.bf16 %v1421_v55, %v1420_v41 }
 0x1e5   : > { %v1536_v2 = vpack.c.bf16 %v1516_v62, %v1515_v57 }
 0x1e6   : > { %v1351_v4 = vmul.f32 0.5, %v1319_v0 }
 0x1e7   : > { %4293 = vmatmul.mubr.bf16.gmra.mrb[20].mxu1 %v1536_v2 }
 0x1e8   : > { %v1390_v5 = vadd.f32 %v5264_v25, %v1351_v4 }
 0x1e9   : > { %v1071_v7 = vpop.f32.mrb[112].mxu0 }
 0x1ea   : > { %v1422_v8 = vmax.f32 %v1390_v5, 0.0  ;;  %1158 = vst [vmem:[#allocation2 + $0x1c0] sm:$0xff] %v1071_v7  ;;  %v1073_v9 = vpop.f32.mrb[113].mxu0 }
 0x1eb   : > { %v1220_v10 = vld [vmem:[#allocation2 + $0x1b0] ss:$2 sm:$0xff]  ;;  %v1284_v13 = vld [vmem:[#allocation2 + $0x1b1] ss:$2 sm:$0xff]  ;;  %v1074_v15 = vpop.f32.mrb[114].mxu0  ;;  %v1517_v24 = vld [vmem:[#allocation3 + $0xc1] sm:$0xff] }
 0x1ec   : > { %1454 = vst [vmem:[#allocation3 + $0xd0] sm:$0xff] %v1422_v8  ;;  %v1320_v16 = vadd.f32 %v1284_v13, %v1220_v10  ;;  %1159 = vst [vmem:[#allocation2 + $0x1c8] sm:$0xff] %v1074_v15  ;;  %v1076_v17 = vpop.f32.mrb[115].mxu0 }
 0x1ee   : > { %v1352_v18 = vmul.f32 0.5, %v1320_v16 }
 0x1f0   : > { %v1391_v19 = vadd.f32 %v5264_v25, %v1352_v18 }
 0x1f1   : > { %v1079_v20 = vpop.f32.mrb[116].mxu0 }
 0x1f2   : > { %v1423_v21 = vmax.f32 %v1391_v19, 0.0  ;;  %1160 = vst [vmem:[#allocation2 + $0x1d0] sm:$0xff] %v1079_v20  ;;  %v1081_v23 = vpop.f32.mrb[117].mxu0 }
 0x1f3   : > { %v1222_v26 = vld [vmem:[#allocation2 + $0x1c0] ss:$2 sm:$0xff]  ;;  %v1286_v27 = vld [vmem:[#allocation2 + $0x1c1] ss:$2 sm:$0xff]  ;;  %v1082_v28 = vpop.f32.mrb[118].mxu0 }
 0x1f4   : > { %v1518_v29 = vld [vmem:[#allocation3 + $0xc9] sm:$0xff]  ;;  %1455 = vst [vmem:[#allocation3 + $0xd8] sm:$0xff] %v1423_v21  ;;  %v1321_v30 = vadd.f32 %v1286_v27, %v1222_v26  ;;  %1161 = vst [vmem:[#allocation2 + $0x1d8] sm:$0xff] %v1082_v28  ;;  %v1084_v31 = vpop.f32.mrb[119].mxu0  ;;  %v5360_v33 = vpack.c.bf16 %v1423_v21, %v1422_v8  ;;  %v1978_v28 = vld [vmem:[#allocation3 + $0x12] sm:$0xff] }
 0x1f5   : > { %v1537_v32 = vpack.c.bf16 %v1518_v29, %v1517_v24  ;;  %v4891_v26 = vld [vmem:[%s5692_s3 + $0x88] sm:$0xff]  }
 0x1f6   : > { %v1353_v34 = vmul.f32 0.5, %v1321_v30  ;;  %v1981_v27 = vld [vmem:[#allocation3 + $0x2a] sm:$0xff]  ;;  %v1980_v30 = vld [vmem:[#allocation3 + $0x22] sm:$0xff] }
 0x1f7   : > { %4296 = vmatprep.mubr.bf16.mxu1 %v1537_v32  ;;  %v1985_v31 = vld [vmem:[#allocation3 + $0x4a] sm:$0xff]  ;;  %v1982_v32 = vld [vmem:[#allocation3 + $0x32] sm:$0xff] }
 0x1f8   : > { %v1392_v37 = vadd.f32 %v5264_v25, %v1353_v34  ;;  %v1984_v34 = vld [vmem:[#allocation3 + $0x42] sm:$0xff] }
 0x1f9   : > { %v1087_v38 = vpop.f32.mrb[120].mxu0 }
 0x1fa   : > { %v1424_v39 = vmax.f32 %v1392_v37, 0.0  ;;  %1162 = vst [vmem:[#allocation2 + $0x1e0] sm:$0xff] %v1087_v38  ;;  %v1089_v41 = vpop.f32.mrb[121].mxu0  ;;  %v4901_v37 = vld [vmem:[%s5692_s3 + $0xd8] sm:$0xff]   ;;  %v2012_v38 = vpack.c.bf16 %v1985_v31, %v1984_v34  ;;  %v4919_v34 = vld [vmem:[%s5694_s5 + $0x68] sm:$0xff]  }
 0x1fb   : > { %v1224_v42 = vld [vmem:[#allocation2 + $0x1d0] ss:$2 sm:$0xff]  ;;  %v1288_v43 = vld [vmem:[#allocation2 + $0x1d1] ss:$2 sm:$0xff]  ;;  %v1090_v46 = vpop.f32.mrb[122].mxu0 }
 0x1fc   : > { %1456 = vst [vmem:[#allocation3 + $0xe0] sm:$0xff] %v1424_v39  ;;  %v1322_v47 = vadd.f32 %v1288_v43, %v1224_v42  ;;  %1163 = vst [vmem:[#allocation2 + $0x1e8] sm:$0xff] %v1090_v46  ;;  %v1092_v48 = vpop.f32.mrb[123].mxu0  ;;  %v1519_v56 = vld [vmem:[#allocation3 + $0xd1] sm:$0xff]  ;;  %v1987_v41 = vld [vmem:[#allocation3 + $0x5a] sm:$0xff] }
 0x1fd   : > { %v1989_v42 = vld [vmem:[#allocation3 + $0x6a] sm:$0xff]  ;;  %v1986_v43 = vld [vmem:[#allocation3 + $0x52] sm:$0xff] }
 0x1fe   : > { %v1354_v51 = vmul.f32 0.5, %v1322_v47  ;;  %v2013_v46 = vpack.c.bf16 %v1987_v41, %v1986_v43  ;;  %v1988_v47 = vld [vmem:[#allocation3 + $0x62] sm:$0xff]  ;;  %v2295_v41 = vld [vmem:[#allocation3 + $0x6b] sm:$0xff] }
 0x1ff   : > { %v4903_v48 = vld [vmem:[%s5692_s3 + $0xe8] sm:$0xff]  }
 0x200   : > { %v1393_v52 = vadd.f32 %v5264_v25, %v1354_v51  ;;  %v2014_v51 = vpack.c.bf16 %v1989_v42, %v1988_v47  ;;  %v2292_v42 = vld [vmem:[#allocation3 + $0x53] sm:$0xff]  ;;  %v4911_v47 = vld [vmem:[%s5692_s3 + $0x128] sm:$0xff]  }
 0x201   : > { %v1095_v53 = vpop.f32.mrb[124].mxu0 }
 0x202   : > { %v1425_v54 = vmax.f32 %v1393_v52, 0.0  ;;  %1164 = vst [vmem:[#allocation2 + $0x1f0] sm:$0xff] %v1095_v53  ;;  %v1097_v55 = vpop.f32.mrb[125].mxu0  ;;  %v4904_v52 = vld [vmem:[%s5692_s3 + $0xf0] sm:$0xff]   ;;  %v1991_v53 = vld [vmem:[#allocation3 + $0x7a] sm:$0xff] }
 0x203   : > { %v1226_v57 = vld [vmem:[#allocation2 + $0x1e0] ss:$2 sm:$0xff]  ;;  %v1290_v58 = vld [vmem:[#allocation2 + $0x1e1] ss:$2 sm:$0xff]  ;;  %v1098_v59 = vpop.f32.mrb[126].mxu0  ;;  %v1990_v55 = vld [vmem:[#allocation3 + $0x72] sm:$0xff] }
 0x204   : > { %v1520_v60 = vld [vmem:[#allocation3 + $0xd9] sm:$0xff]  ;;  %1457 = vst [vmem:[#allocation3 + $0xe8] sm:$0xff] %v1425_v54  ;;  %v1323_v62 = vadd.f32 %v1290_v58, %v1226_v57  ;;  %1165 = vst [vmem:[#allocation2 + $0x1f8] sm:$0xff] %v1098_v59  ;;  %v1100_v0 = vpop.f32.mrb[127].mxu0  ;;  %v1475_v2 = vpack.c.bf16 %v1425_v54, %v1424_v39  ;;  %v1993_v54 = vld [vmem:[#allocation3 + $0x8a] sm:$0xff] }
 0x205   : > { %v1538_v1 = vpack.c.bf16 %v1520_v60, %v1519_v56  ;;  %v4902_v39 = vld [vmem:[%s5692_s3 + $0xe0] sm:$0xff]   ;;  %v2015_v56 = vpack.c.bf16 %v1991_v53, %v1990_v55  ;;  %v4905_v58 = vld [vmem:[%s5692_s3 + $0xf8] sm:$0xff]   ;;  %v1997_v0 = vld [vmem:[#allocation3 + $0xaa] sm:$0xff] }
 0x206   : > { %v1355_v4 = vmul.f32 0.5, %v1323_v62  ;;  %v1992_v57 = vld [vmem:[#allocation3 + $0x82] sm:$0xff]  ;;  %v1995_v62 = vld [vmem:[#allocation3 + $0x9a] sm:$0xff]  ;;  %v2299_v53 = vld [vmem:[#allocation3 + $0x8b] sm:$0xff] }
 0x207   : > { %4297 = vmatmul.mubr.bf16.gmra.mrb[24].mxu1 %v1538_v1  ;;  %v2016_v59 = vpack.c.bf16 %v1993_v54, %v1992_v57  ;;  %v4906_v60 = vld [vmem:[%s5692_s3 + $0x100] sm:$0xff]   ;;  %v1994_v1 = vld [vmem:[#allocation3 + $0x92] sm:$0xff] }
 0x208   : > { %v1394_v5 = vadd.f32 %v5264_v25, %v1355_v4  ;;  %v1996_v4 = vld [vmem:[#allocation3 + $0xa2] sm:$0xff]  ;;  %v2296_v54 = vld [vmem:[#allocation3 + $0x73] sm:$0xff] }
 0x209   : > { %v4913_v57 = vld [vmem:[%s5692_s3 + $0x138] sm:$0xff]  }
 0x20a   : > { %v1426_v7 = vmax.f32 %v1394_v5, 0.0  ;;  %v2018_v5 = vpack.c.bf16 %v1997_v0, %v1996_v4  ;;  %v2305_v4 = vld [vmem:[#allocation3 + $0xbb] sm:$0xff] }
 0x20b   : > { %v1228_v8 = vld [vmem:[#allocation2 + $0x1f0] ss:$2 sm:$0xff]  ;;  %v1292_v9 = vld [vmem:[#allocation2 + $0x1f1] ss:$2 sm:$0xff]  ;;  %v1521_v17 = vld [vmem:[#allocation3 + $0xe1] sm:$0xff] }
 0x20c   : > { %1458 = vst [vmem:[#allocation3 + $0xf0] sm:$0xff] %v1426_v7  ;;  %v1324_v10 = vadd.f32 %v1292_v9, %v1228_v8  ;;  %v1999_v8 = vld [vmem:[#allocation3 + $0xba] sm:$0xff]  ;;  %v2001_v9 = vld [vmem:[#allocation3 + $0xca] sm:$0xff] }
 0x20e   : > { %v1356_v13 = vmul.f32 0.5, %v1324_v10  ;;  %v1998_v10 = vld [vmem:[#allocation3 + $0xb2] sm:$0xff] }
 0x210   : > { %v1395_v15 = vadd.f32 %v5264_v25, %v1356_v13  ;;  %v4892_v25 = vld [vmem:[%s5692_s3 + $0x90] sm:$0xff]   ;;  %v2019_v13 = vpack.c.bf16 %v1999_v8, %v1998_v10 }
 0x212   : > { %v1427_v16 = vmax.f32 %v1395_v15, 0.0  ;;  %v2000_v15 = vld [vmem:[#allocation3 + $0xc2] sm:$0xff] }
 0x213   : > { %v1522_v18 = vld [vmem:[#allocation3 + $0xe9] sm:$0xff] }
 0x214   : > { %1459 = vst [vmem:[#allocation3 + $0xf8] sm:$0xff] %v1427_v16  ;;  %v1539_v19 = vpack.c.bf16 %v1522_v18, %v1521_v17  ;;  %v1476_v20 = vpack.c.bf16 %v1427_v16, %v1426_v7  ;;  %v4914_v7 = vld [vmem:[%s5694_s5 + $0x40] sm:$0xff]   ;;  %v2020_v16 = vpack.c.bf16 %v2001_v9, %v2000_v15  ;;  %v2005_v18 = vld [vmem:[#allocation3 + $0xea] sm:$0xff] }
 0x215   : > { %4497 = vmatpush3.bf16.msra.mxu0 %v4914_v7  ;;  %v2003_v17 = vld [vmem:[#allocation3 + $0xda] sm:$0xff]  ;;  %v2306_v9 = vld [vmem:[#allocation3 + $0xc3] sm:$0xff]  ;;  %v2311_v15 = vld [vmem:[#allocation3 + $0xeb] sm:$0xff] }
 0x216   : > { %4300 = vmatprep.mubr.bf16.mxu1 %v1539_v19  ;;  %4498 = vmatprep.subr.bf16.mxu0 %v5020_v45  ;;  %v2002_v19 = vld [vmem:[#allocation3 + $0xd2] sm:$0xff] }
 0x217   : > { %v2304_v7 = vld [vmem:[#allocation3 + $0xb3] sm:$0xff] }
 0x218   : > { %v2325_v8 = vpack.c.bf16 %v2305_v4, %v2304_v7  ;;  %v5478_v4 = vld [vmem:[#allocation3 + $0x100] sm:$0xff] }
 0x219   : > { %v4922_v7 = vld [vmem:[%s5694_s5 + $0x80] sm:$0xff]   ;;  %4512 = vmatprep.mubr.msk.bf16.mxu0 %vm5021_vm1, %v5478_v4 }
 0x21b   : > { %v1523_v21 = vld [vmem:[#allocation3 + $0xf1] sm:$0xff]  ;;  %v1524_v23 = vld [vmem:[#allocation3 + $0xf9] sm:$0xff] }
 0x21c   : > { %v1540_v24 = vpack.c.bf16 %v1524_v23, %v1523_v21  ;;  %v2004_v21 = vld [vmem:[#allocation3 + $0xe2] sm:$0xff] }
 0x21d   : > { %v2022_v23 = vpack.c.bf16 %v2005_v18, %v2004_v21  ;;  %v2310_v18 = vld [vmem:[#allocation3 + $0xe3] sm:$0xff]  ;;  %v2589_v21 = vld [vmem:[#allocation3 + $0xc] sm:$0xff] }
 0x21e   : > { %4301 = vmatmul.mubr.bf16.gmra.mrb[28].mxu1 %v1540_v24  ;;  %v2006_v24 = vld [vmem:[#allocation3 + $0xf2] sm:$0xff] }
 0x21f   : > { %4320 = vmatprep.mubr.bf16.mxu1 %v5274_v50  ;;  %v4893_v50 = vld [vmem:[%s5692_s3 + $0x98] sm:$0xff]  }
 0x226   : > { %4321 = vmatmul.mubr.bf16.vlgmr.msra.gmra.mrb[0].mxu1 %v5280_v11  ;;  %v4894_v11 = vld [vmem:[%s5692_s3 + $0xa0] sm:$0xff]  }
 0x227   : > { %4353 = vmatpush3.bf16.msra.mxu1 %v5337_v63  ;;  %4324 = vmatprep.mubr.bf16.mxu1 %v5284_v36  ;;  %v4895_v36 = vld [vmem:[%s5692_s3 + $0xa8] sm:$0xff]  }
 0x228   : > { %4354 = vmatprep.subr.bf16.mxu1 %v4891_v26 }
 0x22b   : > { %4355 = vmatpush3.bf16.msra.mxu1 %v4891_v26  ;;  %v2007_v26 = vld [vmem:[#allocation3 + $0xfa] sm:$0xff] }
 0x22c   : > { %4356 = vmatprep.subr.bf16.mxu1 %v4892_v25 }
 0x22e   : > { %4325 = vmatmul.mubr.bf16.gmra.mrb[4].mxu1 %v5288_v61  ;;  %v4896_v61 = vld [vmem:[%s5692_s3 + $0xb0] sm:$0xff]  }
 0x22f   : > { %4328 = vmatprep.mubr.bf16.mxu1 %v5292_v22  ;;  %4357 = vmatpush3.bf16.msra.mxu1 %v4892_v25  ;;  %v4897_v22 = vld [vmem:[%s5692_s3 + $0xb8] sm:$0xff]   ;;  %v2283_v25 = vld [vmem:[#allocation3 + $0xb] sm:$0xff] }
 0x230   : > { %4358 = vmatprep.subr.bf16.mxu1 %v4893_v50 }
 0x233   : > { %4359 = vmatpush3.bf16.msra.mxu1 %v4893_v50  ;;  %v2023_v50 = vpack.c.bf16 %v2007_v26, %v2006_v24  ;;  %v2588_v24 = vld [vmem:[#allocation3 + $0x4] sm:$0xff] }
 0x234   : > { %4360 = vmatprep.subr.bf16.mxu1 %v4894_v11  ;;  %v2620_v26 = vpack.c.bf16 %v2589_v21, %v2588_v24 }
 0x236   : > { %4329 = vmatmul.mubr.bf16.gmra.mrb[8].mxu1 %v5299_v49  ;;  %v4898_v49 = vld [vmem:[%s5692_s3 + $0xc0] sm:$0xff]  }
 0x237   : > { %4332 = vmatprep.mubr.bf16.mxu1 %v5309_v14  ;;  %4361 = vmatpush3.bf16.msra.mxu1 %v4894_v11  ;;  %v1977_v14 = vld [vmem:[#allocation3 + $0xa] sm:$0xff] }
 0x238   : > { %4362 = vmatprep.subr.bf16.mxu1 %v4895_v36  ;;  %v2282_v11 = vld [vmem:[#allocation3 + $0x3] sm:$0xff] }
 0x23b   : > { %4363 = vmatpush3.bf16.msra.mxu1 %v4895_v36  ;;  %v2314_v36 = vpack.c.bf16 %v2283_v25, %v2282_v11  ;;  %v2591_v25 = vld [vmem:[#allocation3 + $0x1c] sm:$0xff]  ;;  %v2590_v11 = vld [vmem:[#allocation3 + $0x14] sm:$0xff] }
 0x23c   : > { %4364 = vmatprep.subr.bf16.mxu1 %v4896_v61 }
 0x23e   : > { %4333 = vmatmul.mubr.bf16.gmra.mrb[12].mxu1 %v5322_v44  ;;  %v1976_v44 = vld [vmem:[#allocation3 + $0x2] sm:$0xff] }
 0x23f   : > { %4336 = vmatprep.mubr.bf16.mxu1 %v5340_v12  ;;  %4365 = vmatpush3.bf16.msra.mxu1 %v4896_v61  ;;  %v2008_v63 = vpack.c.bf16 %v1977_v14, %v1976_v44  ;;  %v1979_v12 = vld [vmem:[#allocation3 + $0x1a] sm:$0xff]  ;;  %v4915_v61 = vld [vmem:[%s5694_s5 + $0x48] sm:$0xff]  }
 0x240   : > { %4366 = vmatprep.subr.bf16.mxu1 %v4897_v22  ;;  %v2009_v29 = vpack.c.bf16 %v1979_v12, %v1978_v28  ;;  %4499 = vmatpush3.bf16.msra.mxu0 %v4915_v61  ;;  %v2287_v14 = vld [vmem:[#allocation3 + $0x2b] sm:$0xff]  ;;  %v2284_v44 = vld [vmem:[#allocation3 + $0x13] sm:$0xff]  ;;  %v2286_v12 = vld [vmem:[#allocation3 + $0x23] sm:$0xff] }
 0x241   : > { %4500 = vmatprep.subr.bf16.mxu0 %v5020_v45  ;;  %v4917_v28 = vld [vmem:[%s5694_s5 + $0x58] sm:$0xff]   ;;  %v2592_v61 = vld [vmem:[#allocation3 + $0x24] sm:$0xff] }
 0x243   : > { %4367 = vmatpush3.bf16.msra.mxu1 %v4897_v22  ;;  %v4916_v22 = vld [vmem:[%s5694_s5 + $0x50] sm:$0xff]  }
 0x244   : > { %4400 = vmatprep.subr.bf16.mxu1 %v4898_v49  ;;  %4501 = vmatpush3.bf16.msra.mxu0 %v4916_v22 }
 0x245   : > { %4502 = vmatprep.subr.bf16.mxu0 %v5020_v45 }
 0x246   : > { %4337 = vmatmul.mubr.bf16.gmra.mrb[16].mxu1 %v5344_v40  ;;  %v4899_v40 = vld [vmem:[%s5692_s3 + $0xc8] sm:$0xff]  }
 0x247   : > { %4340 = vmatprep.mubr.bf16.mxu1 %v5348_v6  ;;  %v2010_v6 = vpack.c.bf16 %v1981_v27, %v1980_v30  ;;  %v4907_v27 = vld [vmem:[%s5692_s3 + $0x108] sm:$0xff]   ;;  %v4908_v30 = vld [vmem:[%s5692_s3 + $0x110] sm:$0xff]  }
 0x248   : > { %4503 = vmatpush3.bf16.msra.mxu0 %v4917_v28  ;;  %v2599_v28 = vld [vmem:[#allocation3 + $0x5c] sm:$0xff] }
 0x249   : > { %4504 = vmatprep.subr.bf16.mxu0 %v5020_v45 }
 0x24e   : > { %4341 = vmatmul.mubr.bf16.gmra.mrb[20].mxu1 %v5352_v35  ;;  %v4900_v35 = vld [vmem:[%s5692_s3 + $0xd0] sm:$0xff]  }
 0x24f   : > { %4344 = vmatprep.mubr.bf16.mxu1 %v5356_v3  ;;  %v1983_v3 = vld [vmem:[#allocation3 + $0x3a] sm:$0xff] }
 0x256   : > { %4345 = vmatmul.mubr.bf16.gmra.mrb[24].mxu1 %v5360_v33  ;;  %v2011_v33 = vpack.c.bf16 %v1983_v3, %v1982_v32  ;;  %v2288_v3 = vld [vmem:[#allocation3 + $0x33] sm:$0xff]  ;;  %v2290_v32 = vld [vmem:[#allocation3 + $0x43] sm:$0xff] }
 0x257   : > { %4348 = vmatprep.mubr.bf16.mxu1 %v1475_v2  ;;  %v2017_v2 = vpack.c.bf16 %v1995_v62, %v1994_v1  ;;  %v2300_v62 = vld [vmem:[#allocation3 + $0x93] sm:$0xff]  ;;  %v2302_v1 = vld [vmem:[#allocation3 + $0xa3] sm:$0xff] }
 0x25e   : > { %4349 = vmatmul.mubr.bf16.gmra.mrb[28].mxu1 %v1476_v20  ;;  %v2021_v20 = vpack.c.bf16 %v2003_v17, %v2002_v19  ;;  %v2328_v19 = vpack.c.bf16 %v2311_v15, %v2310_v18  ;;  %v4927_v15 = vld [vmem:[%s5694_s5 + $0xa8] sm:$0xff]  }
 0x25f   : > { %4368 = vmatprep.mubr.bf16.mxu1 %v2008_v63 }
 0x266   : > { %4369 = vmatmul.mubr.bf16.vlgmr.msra.gmra.mrb[0].mxu1 %v2009_v29  ;;  %v2316_v29 = vpack.c.bf16 %v2287_v14, %v2286_v12  ;;  %v2597_v14 = vld [vmem:[#allocation3 + $0x4c] sm:$0xff]  ;;  %v2596_v12 = vld [vmem:[#allocation3 + $0x44] sm:$0xff] }
 0x267   : > { %4401 = vmatpush3.bf16.msra.mxu1 %v4898_v49  ;;  %4372 = vmatprep.mubr.bf16.mxu1 %v2010_v6  ;;  %v2285_v49 = vld [vmem:[#allocation3 + $0x1b] sm:$0xff] }
 0x268   : > { %4402 = vmatprep.subr.bf16.mxu1 %v4899_v40  ;;  %v2315_v63 = vpack.c.bf16 %v2285_v49, %v2284_v44  ;;  %v2289_v6 = vld [vmem:[#allocation3 + $0x3b] sm:$0xff] }
 0x269   : > { %v2317_v31 = vpack.c.bf16 %v2289_v6, %v2288_v3  ;;  %v2595_v49 = vld [vmem:[#allocation3 + $0x3c] sm:$0xff]  ;;  %v2594_v44 = vld [vmem:[#allocation3 + $0x34] sm:$0xff]  ;;  %v2600_v6 = vld [vmem:[#allocation3 + $0x64] sm:$0xff] }
 0x26a   : > { %v2603_v3 = vld [vmem:[#allocation3 + $0x7c] sm:$0xff] }
 0x26b   : > { %4403 = vmatpush3.bf16.msra.mxu1 %v4899_v40  ;;  %v4918_v40 = vld [vmem:[%s5694_s5 + $0x60] sm:$0xff]  }
 0x26c   : > { %4404 = vmatprep.subr.bf16.mxu1 %v4900_v35  ;;  %4505 = vmatpush3.bf16.msra.mxu0 %v4918_v40 }
 0x26d   : > { %4506 = vmatprep.subr.bf16.mxu0 %v5020_v45 }
 0x26e   : > { %4373 = vmatmul.mubr.bf16.gmra.mrb[4].mxu1 %v2011_v33  ;;  %v4909_v33 = vld [vmem:[%s5692_s3 + $0x118] sm:$0xff]  }
 0x26f   : > { %4376 = vmatprep.mubr.bf16.mxu1 %v2012_v38  ;;  %4405 = vmatpush3.bf16.msra.mxu1 %v4900_v35  ;;  %v2291_v35 = vld [vmem:[#allocation3 + $0x4b] sm:$0xff]  ;;  %v4910_v38 = vld [vmem:[%s5692_s3 + $0x120] sm:$0xff]  }
 0x270   : > { %4406 = vmatprep.subr.bf16.mxu1 %v4901_v37  ;;  %4507 = vmatpush3.bf16.msra.mxu0 %v4919_v34  ;;  %v2604_v34 = vld [vmem:[#allocation3 + $0x84] sm:$0xff] }
 0x271   : > { %4508 = vmatprep.subr.bf16.mxu0 %v5020_v45 }
 0x273   : > { %4407 = vmatpush3.bf16.msra.mxu1 %v4901_v37  ;;  %v2318_v37 = vpack.c.bf16 %v2291_v35, %v2290_v32  ;;  %v2602_v32 = vld [vmem:[#allocation3 + $0x74] sm:$0xff] }
 0x274   : > { %4408 = vmatprep.subr.bf16.mxu1 %v4902_v39 }
 0x276   : > { %4377 = vmatmul.mubr.bf16.gmra.mrb[8].mxu1 %v2013_v46  ;;  %v2294_v46 = vld [vmem:[#allocation3 + $0x63] sm:$0xff] }
 0x277   : > { %4380 = vmatprep.mubr.bf16.mxu1 %v2014_v51  ;;  %4409 = vmatpush3.bf16.msra.mxu1 %v4902_v39  ;;  %v2293_v39 = vld [vmem:[#allocation3 + $0x5b] sm:$0xff]  ;;  %v4912_v51 = vld [vmem:[%s5692_s3 + $0x130] sm:$0xff]  }
 0x278   : > { %4410 = vmatprep.subr.bf16.mxu1 %v4903_v48  ;;  %v2319_v43 = vpack.c.bf16 %v2293_v39, %v2292_v42  ;;  %v2609_v39 = vld [vmem:[#allocation3 + $0xac] sm:$0xff] }
 0x27b   : > { %4411 = vmatpush3.bf16.msra.mxu1 %v4903_v48  ;;  %v2320_v48 = vpack.c.bf16 %v2295_v41, %v2294_v46  ;;  %v2606_v41 = vld [vmem:[#allocation3 + $0x94] sm:$0xff] }
 0x27c   : > { %4412 = vmatprep.subr.bf16.mxu1 %v4904_v52 }
 0x27e   : > { %4381 = vmatmul.mubr.bf16.gmra.mrb[12].mxu1 %v2015_v56  ;;  %v2298_v56 = vld [vmem:[#allocation3 + $0x83] sm:$0xff] }
 0x27f   : > { %4384 = vmatprep.mubr.bf16.mxu1 %v2016_v59  ;;  %4413 = vmatpush3.bf16.msra.mxu1 %v4904_v52  ;;  %v2297_v52 = vld [vmem:[#allocation3 + $0x7b] sm:$0xff] }
 0x280   : > { %4414 = vmatprep.subr.bf16.mxu1 %v4905_v58  ;;  %v2321_v55 = vpack.c.bf16 %v2297_v52, %v2296_v54  ;;  %v2301_v59 = vld [vmem:[#allocation3 + $0x9b] sm:$0xff] }
 0x281   : > { %v2323_v0 = vpack.c.bf16 %v2301_v59, %v2300_v62  ;;  %v2616_v59 = vld [vmem:[#allocation3 + $0xe4] sm:$0xff]  ;;  %v2618_v62 = vld [vmem:[#allocation3 + $0xf4] sm:$0xff] }
 0x283   : > { %4415 = vmatpush3.bf16.msra.mxu1 %v4905_v58  ;;  %v2322_v58 = vpack.c.bf16 %v2299_v53, %v2298_v56  ;;  %v2612_v53 = vld [vmem:[#allocation3 + $0xc4] sm:$0xff]  ;;  %v2617_v56 = vld [vmem:[#allocation3 + $0xec] sm:$0xff] }
 0x284   : > { %4448 = vmatprep.subr.bf16.mxu1 %v4906_v60 }
 0x286   : > { %4385 = vmatmul.mubr.bf16.gmra.mrb[16].mxu1 %v2017_v2 }
 0x287   : > { %4388 = vmatprep.mubr.bf16.mxu1 %v2018_v5  ;;  %v2307_v5 = vld [vmem:[#allocation3 + $0xcb] sm:$0xff] }
 0x288   : > { %v2326_v10 = vpack.c.bf16 %v2307_v5, %v2306_v9  ;;  %v4921_v5 = vld [vmem:[%s5694_s5 + $0x78] sm:$0xff]   ;;  %v4924_v9 = vld [vmem:[%s5694_s5 + $0x90] sm:$0xff]  }
 0x28e   : > { %4389 = vmatmul.mubr.bf16.gmra.mrb[20].mxu1 %v2019_v13  ;;  %v2309_v13 = vld [vmem:[#allocation3 + $0xdb] sm:$0xff] }
 0x28f   : > { %4392 = vmatprep.mubr.bf16.mxu1 %v2020_v16  ;;  %v2308_v16 = vld [vmem:[#allocation3 + $0xd3] sm:$0xff] }
 0x290   : > { %v2327_v17 = vpack.c.bf16 %v2309_v13, %v2308_v16  ;;  %v4926_v13 = vld [vmem:[%s5694_s5 + $0xa0] sm:$0xff]   ;;  %v4928_v16 = vld [vmem:[%s5694_s5 + $0xb0] sm:$0xff]  }
 0x296   : > { %4393 = vmatmul.mubr.bf16.gmra.mrb[24].mxu1 %v2021_v20  ;;  %v2313_v20 = vld [vmem:[#allocation3 + $0xfb] sm:$0xff] }
 0x297   : > { %4396 = vmatprep.mubr.bf16.mxu1 %v2022_v23 }
 0x29e   : > { %4397 = vmatmul.mubr.bf16.gmra.mrb[28].mxu1 %v2023_v50  ;;  %v2593_v50 = vld [vmem:[#allocation3 + $0x2c] sm:$0xff] }
 0x29f   : > { %4416 = vmatprep.mubr.bf16.mxu1 %v2314_v36  ;;  %v2621_v36 = vpack.c.bf16 %v2591_v25, %v2590_v11  ;;  %v2622_v22 = vpack.c.bf16 %v2593_v50, %v2592_v61 }
 0x2a6   : > { %4417 = vmatmul.mubr.bf16.vlgmr.msra.gmra.mrb[0].mxu1 %v2315_v63  ;;  %v2623_v63 = vpack.c.bf16 %v2595_v49, %v2594_v44 }
 0x2a7   : > { %4449 = vmatpush3.bf16.msra.mxu1 %v4906_v60  ;;  %4420 = vmatprep.mubr.bf16.mxu1 %v2316_v29  ;;  %v2303_v60 = vld [vmem:[#allocation3 + $0xab] sm:$0xff] }
 0x2a8   : > { %4450 = vmatprep.subr.bf16.mxu1 %v4907_v27  ;;  %v2324_v2 = vpack.c.bf16 %v2303_v60, %v2302_v1  ;;  %v2601_v29 = vld [vmem:[#allocation3 + $0x6c] sm:$0xff]  ;;  %v2634_v60 = vpack.c.bf16 %v2617_v56, %v2616_v59 }
 0x2a9   : > { %v2626_v35 = vpack.c.bf16 %v2601_v29, %v2600_v6 }
 0x2ab   : > { %4451 = vmatpush3.bf16.msra.mxu1 %v4907_v27  ;;  %v2624_v27 = vpack.c.bf16 %v2597_v14, %v2596_v12 }
 0x2ac   : > { %4452 = vmatprep.subr.bf16.mxu1 %v4908_v30 }
 0x2ae   : > { %4421 = vmatmul.mubr.bf16.gmra.mrb[4].mxu1 %v2317_v31  ;;  %v2605_v31 = vld [vmem:[#allocation3 + $0x8c] sm:$0xff] }
 0x2af   : > { %4424 = vmatprep.mubr.bf16.mxu1 %v2318_v37  ;;  %4453 = vmatpush3.bf16.msra.mxu1 %v4908_v30  ;;  %v2598_v30 = vld [vmem:[#allocation3 + $0x54] sm:$0xff]  ;;  %v2628_v37 = vpack.c.bf16 %v2605_v31, %v2604_v34 }
 0x2b0   : > { %4454 = vmatprep.subr.bf16.mxu1 %v4909_v33  ;;  %v2625_v40 = vpack.c.bf16 %v2599_v28, %v2598_v30 }
 0x2b3   : > { %4455 = vmatpush3.bf16.msra.mxu1 %v4909_v33  ;;  %v2627_v33 = vpack.c.bf16 %v2603_v3, %v2602_v32 }
 0x2b4   : > { %4456 = vmatprep.subr.bf16.mxu1 %v4910_v38 }
 0x2b6   : > { %4425 = vmatmul.mubr.bf16.gmra.mrb[8].mxu1 %v2319_v43  ;;  %v2608_v43 = vld [vmem:[#allocation3 + $0xa4] sm:$0xff] }
 0x2b7   : > { %4428 = vmatprep.mubr.bf16.mxu1 %v2320_v48  ;;  %4457 = vmatpush3.bf16.msra.mxu1 %v4910_v38  ;;  %v2607_v38 = vld [vmem:[#allocation3 + $0x9c] sm:$0xff]  ;;  %v2630_v46 = vpack.c.bf16 %v2609_v39, %v2608_v43  ;;  %v2613_v48 = vld [vmem:[#allocation3 + $0xcc] sm:$0xff] }
 0x2b8   : > { %4458 = vmatprep.subr.bf16.mxu1 %v4911_v47  ;;  %v2629_v42 = vpack.c.bf16 %v2607_v38, %v2606_v41  ;;  %v2632_v54 = vpack.c.bf16 %v2613_v48, %v2612_v53 }
 0x2bb   : > { %4459 = vmatpush3.bf16.msra.mxu1 %v4911_v47  ;;  %v2611_v47 = vld [vmem:[#allocation3 + $0xbc] sm:$0xff] }
 0x2bc   : > { %4460 = vmatprep.subr.bf16.mxu1 %v4912_v51 }
 0x2be   : > { %4429 = vmatmul.mubr.bf16.gmra.mrb[12].mxu1 %v2321_v55  ;;  %v2615_v55 = vld [vmem:[#allocation3 + $0xdc] sm:$0xff] }
 0x2bf   : > { %4432 = vmatprep.mubr.bf16.mxu1 %v2322_v58  ;;  %4461 = vmatpush3.bf16.msra.mxu1 %v4912_v51  ;;  %v2610_v51 = vld [vmem:[#allocation3 + $0xb4] sm:$0xff] }
 0x2c0   : > { %4462 = vmatprep.subr.bf16.mxu1 %v4913_v57  ;;  %v2631_v52 = vpack.c.bf16 %v2611_v47, %v2610_v51 }
 0x2c3   : > { %4463 = vmatpush3.bf16.msra.mxu1 %v4913_v57  ;;  %v2614_v57 = vld [vmem:[#allocation3 + $0xd4] sm:$0xff] }
 0x2c4   : > { %4536 = vmatprep.subr.bf16.mxu1 %v5020_v45  ;;  %v2312_v45 = vld [vmem:[#allocation3 + $0xf3] sm:$0xff]  ;;  %v2633_v58 = vpack.c.bf16 %v2615_v55, %v2614_v57 }
 0x2c5   : > { %v2329_v23 = vpack.c.bf16 %v2313_v20, %v2312_v45 }
 0x2c6   : > { %4433 = vmatmul.mubr.bf16.gmra.mrb[16].mxu1 %v2323_v0  ;;  %v2619_v0 = vld [vmem:[#allocation3 + $0xfc] sm:$0xff] }
 0x2c7   : > { %4436 = vmatprep.mubr.bf16.mxu1 %v2324_v2  ;;  %v2635_v1 = vpack.c.bf16 %v2619_v0, %v2618_v62  ;;  %v4920_v2 = vld [vmem:[%s5694_s5 + $0x70] sm:$0xff]  }
 0x2c8   : > { %4509 = vmatpush3.bf16.msra.mxu0 %v4920_v2 }
 0x2c9   : > { %4510 = vmatprep.subr.bf16.mxu0 %v5478_v4 }
 0x2cc   : > { %4511 = vmatpush3.bf16.msra.mxu0 %v4921_v5 }
 0x2cd   : > { %4516 = vmatprep.subr.bf16.mxu0 %v5478_v4 }
 0x2ce   : > { %4437 = vmatmul.mubr.bf16.gmra.mrb[20].mxu1 %v2325_v8  ;;  %v4923_v8 = vld [vmem:[%s5694_s5 + $0x88] sm:$0xff]  }
 0x2cf   : > { %4440 = vmatprep.mubr.bf16.mxu1 %v2326_v10  ;;  %v4925_v10 = vld [vmem:[%s5694_s5 + $0x98] sm:$0xff]  }
 0x2d6   : > { %4441 = vmatmul.mubr.bf16.gmra.mrb[24].mxu1 %v2327_v17  ;;  %v4929_v17 = vld [vmem:[%s5694_s5 + $0xb8] sm:$0xff]  }
 0x2d7   : > { %4444 = vmatprep.mubr.bf16.mxu1 %v2328_v19 }
 0x2de   : > { %4445 = vmatmul.mubr.bf16.gmra.mrb[28].mxu1 %v2329_v23 }
 0x2df   : > { %4464 = vmatprep.mubr.bf16.mxu1 %v2620_v26 }
 0x2e6   : > { %4465 = vmatmul.mubr.bf16.vlgmr.msra.gmra.mrb[0].mxu1 %v2621_v36 }
 0x2e7   : > { %4468 = vmatprep.mubr.bf16.mxu1 %v2622_v22  ;;  %4537 = vmatpush3.bf16.msra.mxu1 %v4922_v7 }
 0x2e8   : > { %4538 = vmatprep.subr.bf16.mxu1 %v5478_v4 }
 0x2eb   : > { %4539 = vmatpush3.bf16.msra.mxu1 %v4923_v8 }
 0x2ec   : > { %4540 = vmatprep.subr.bf16.mxu1 %v5478_v4 }
 0x2ee   : > { %4469 = vmatmul.mubr.bf16.gmra.mrb[4].mxu1 %v2623_v63 }
 0x2ef   : > { %4472 = vmatprep.mubr.bf16.mxu1 %v2624_v27  ;;  %4541 = vmatpush3.bf16.msra.mxu1 %v4924_v9 }
 0x2f0   : > { %4542 = vmatprep.subr.bf16.mxu1 %v5478_v4 }
 0x2f3   : > { %4543 = vmatpush3.bf16.msra.mxu1 %v4925_v10 }
 0x2f4   : > { %4544 = vmatprep.subr.bf16.mxu1 %v5478_v4 }
 0x2f6   : > { %4473 = vmatmul.mubr.bf16.gmra.mrb[8].mxu1 %v2625_v40 }
 0x2f7   : > { %4476 = vmatprep.mubr.bf16.mxu1 %v2626_v35  ;;  %4545 = vmatpush3.bf16.msra.mxu1 %v4926_v13 }
 0x2f8   : > { %4546 = vmatprep.subr.bf16.mxu1 %v5478_v4 }
 0x2fb   : > { %4547 = vmatpush3.bf16.msra.mxu1 %v4927_v15 }
 0x2fc   : > { %4548 = vmatprep.subr.bf16.mxu1 %v5478_v4 }
 0x2fe   : > { %4477 = vmatmul.mubr.bf16.gmra.mrb[12].mxu1 %v2627_v33 }
 0x2ff   : > { %4480 = vmatprep.mubr.bf16.mxu1 %v2628_v37  ;;  %4549 = vmatpush3.bf16.msra.mxu1 %v4928_v16 }
 0x300   : > { %4550 = vmatprep.subr.bf16.mxu1 %v5478_v4 }
 0x303   : > { %4551 = vmatpush3.bf16.msra.mxu1 %v4929_v17 }
 0x304   : > { %4576 = vmatprep.subr.bf16.mxu1 %v5478_v4 }
 0x306   : > { %4481 = vmatmul.mubr.bf16.gmra.mrb[16].mxu1 %v2629_v42 }
 0x307   : > { %4484 = vmatprep.mubr.bf16.mxu1 %v2630_v46 }
 0x30e   : > { %4485 = vmatmul.mubr.bf16.gmra.mrb[20].mxu1 %v2631_v52 }
 0x30f   : > { %4488 = vmatprep.mubr.bf16.mxu1 %v2632_v54 }
 0x316   : > { %4489 = vmatmul.mubr.bf16.gmra.mrb[24].mxu1 %v2633_v58 }
 0x317   : > { %4492 = vmatprep.mubr.bf16.mxu1 %v2634_v60 }
 0x31e   : > { %4493 = vmatmul.mubr.bf16.gmra.mrb[28].mxu1 %v2635_v1 }
 0x31f   : > { %4552 = vmatprep.mubr.msk.bf16.mxu1 %vm5021_vm1, %v5478_v4 }
 0x3b9   : > { %v4466_v18 = vpop.f32.mrb[0].mxu1 }
 0x3ba   : > { %2896 = vst [vmem:[#allocation4 + $0x10] sm:$0xff] %v4466_v18  ;;  %v2735_v19 = vpop.f32.mrb[1].mxu1 }
 0x3bb   : > { %2894 = vst [vmem:[#allocation4] sm:$0xff] %v2735_v19  ;;  %v4467_v45 = vpop.f32.mrb[2].mxu1 }
 0x3bc   : > { %2897 = vst [vmem:[#allocation4 + $0x18] sm:$0xff] %v4467_v45  ;;  %v2738_v20 = vpop.f32.mrb[3].mxu1 }
 0x3bd   : > { %2895 = vst [vmem:[#allocation4 + $0x8] sm:$0xff] %v2738_v20 }
 0x3c1   : > { %v4470_v21 = vpop.f32.mrb[4].mxu1 }
 0x3c2   : > { %2900 = vst [vmem:[#allocation4 + $0x30] sm:$0xff] %v4470_v21  ;;  %v2751_v23 = vpop.f32.mrb[5].mxu1  ;;  %v2990_v31 = vld [vmem:[#allocation4 + $0x2] ss:$16 sm:$0x3] }
 0x3c3   : > { %2898 = vst [vmem:[#allocation4 + $0x20] sm:$0xff] %v2751_v23  ;;  %v4471_v24 = vpop.f32.mrb[6].mxu1  ;;  %v3006_v32 = vld [vmem:[#allocation4 + $0x3] ss:$16 sm:$0x3] }
 0x3c4   : > { %2901 = vst [vmem:[#allocation4 + $0x38] sm:$0xff] %v4471_v24  ;;  %v2754_v26 = vpop.f32.mrb[7].mxu1  ;;  %v3226_v43 = vld [vmem:[#allocation4 + $0x4] ss:$16 sm:$0x3] }
 0x3c5   : > { %2899 = vst [vmem:[#allocation4 + $0x28] sm:$0xff] %v2754_v26  ;;  %v3242_v47 = vld [vmem:[#allocation4 + $0x5] ss:$16 sm:$0x3] }
 0x3c9   : > { %v4474_v25 = vpop.f32.mrb[8].mxu1 }
 0x3ca   : > { %2904 = vst [vmem:[#allocation4 + $0x50] sm:$0xff] %v4474_v25  ;;  %v2767_v50 = vpop.f32.mrb[9].mxu1  ;;  %v2991_v35 = vld [vmem:[#allocation4 + $0x2] ss:$16 sm:$0xc] }
 0x3cb   : > { %2902 = vst [vmem:[#allocation4 + $0x40] sm:$0xff] %v2767_v50  ;;  %v4475_v11 = vpop.f32.mrb[10].mxu1  ;;  %v3007_v33 = vld [vmem:[#allocation4 + $0x3] ss:$16 sm:$0xc]  ;;  %v2992_v41 = vor.u32 %v2991_v35, %v2990_v31 }
 0x3cc   : > { %2905 = vst [vmem:[#allocation4 + $0x58] sm:$0xff] %v4475_v11  ;;  %v2770_v36 = vpop.f32.mrb[11].mxu1  ;;  %v3008_v42 = vor.u32 %v3007_v33, %v3006_v32  ;;  %v3227_v46 = vld [vmem:[#allocation4 + $0x4] ss:$16 sm:$0xc] }
 0x3cd   : > { %2903 = vst [vmem:[#allocation4 + $0x48] sm:$0xff] %v2770_v36  ;;  %v3243_v48 = vld [vmem:[#allocation4 + $0x5] ss:$16 sm:$0xc]  ;;  %v3228_v57 = vor.u32 %v3227_v46, %v3226_v43 }
 0x3ce   : > { %v3244_v59 = vor.u32 %v3243_v48, %v3242_v47 }
 0x3d1   : > { %v4478_v61 = vpop.f32.mrb[12].mxu1 }
 0x3d2   : > { %2908 = vst [vmem:[#allocation4 + $0x70] sm:$0xff] %v4478_v61  ;;  %v2783_v22 = vpop.f32.mrb[13].mxu1  ;;  %v2993_v37 = vld [vmem:[#allocation4 + $0x2] ss:$16 sm:$0x30] }
 0x3d3   : > { %2906 = vst [vmem:[#allocation4 + $0x60] sm:$0xff] %v2783_v22  ;;  %v4479_v49 = vpop.f32.mrb[14].mxu1  ;;  %v3009_v39 = vld [vmem:[#allocation4 + $0x3] ss:$16 sm:$0x30]  ;;  %v2994_v53 = vor.u32 %v2993_v37, %v2992_v41 }
 0x3d4   : > { %2909 = vst [vmem:[#allocation4 + $0x78] sm:$0xff] %v4479_v49  ;;  %v2786_v14 = vpop.f32.mrb[15].mxu1  ;;  %v3010_v54 = vor.u32 %v3009_v39, %v3008_v42  ;;  %v3229_v55 = vld [vmem:[#allocation4 + $0x4] ss:$16 sm:$0x30] }
 0x3d5   : > { %2907 = vst [vmem:[#allocation4 + $0x68] sm:$0xff] %v2786_v14  ;;  %v3245_v56 = vld [vmem:[#allocation4 + $0x5] ss:$16 sm:$0x30]  ;;  %v3230_v5 = vor.u32 %v3229_v55, %v3228_v57  ;;  %v4931_v55 = vld [vmem:[%s5694_s5 + $0x100] sm:$0xff]  }
 0x3d6   : > { %v3246_v7 = vor.u32 %v3245_v56, %v3244_v59  ;;  %v4932_v57 = vld [vmem:[%s5694_s5 + $0x8] sm:$0xff]  }
 0x3d7   : > { %v2927_v59 = vld [vmem:[#allocation4] ss:$16 sm:$0xc] }
 0x3d9   : > { %v4482_v44 = vpop.f32.mrb[16].mxu1 }
 0x3da   : > { %2912 = vst [vmem:[#allocation4 + $0x90] sm:$0xff] %v4482_v44  ;;  %v2799_v63 = vpop.f32.mrb[17].mxu1  ;;  %v2995_v51 = vld [vmem:[#allocation4 + $0x2] ss:$16 sm:$0xc0] }
 0x3db   : > { %2910 = vst [vmem:[#allocation4 + $0x80] sm:$0xff] %v2799_v63  ;;  %v4483_v12 = vpop.f32.mrb[18].mxu1  ;;  %v3011_v52 = vld [vmem:[#allocation4 + $0x3] ss:$16 sm:$0xc0]  ;;  %v2996_v62 = vor.u32 %v2995_v51, %v2994_v53  ;;  %v4930_v51 = vld [vmem:[%s5694_s5] sm:$0xff]  }
 0x3dc   : > { %2913 = vst [vmem:[#allocation4 + $0x98] sm:$0xff] %v4483_v12  ;;  %v2802_v27 = vpop.f32.mrb[19].mxu1  ;;  %v3231_v58 = vld [vmem:[#allocation4 + $0x4] ss:$16 sm:$0xc0]  ;;  %v3012_v0 = vor.u32 %v3011_v52, %v3010_v54 }
 0x3dd   : > { %2911 = vst [vmem:[#allocation4 + $0x88] sm:$0xff] %v2802_v27  ;;  %v3247_v1 = vld [vmem:[#allocation4 + $0x5] ss:$16 sm:$0xc0]  ;;  %v3232_v17 = vor.u32 %v3231_v58, %v3230_v5 }
 0x3de   : > { %v3248_v18 = vor.u32 %v3247_v1, %v3246_v7  ;;  %v3021_v19 = vadd.f32 %v3012_v0, %v2996_v62  ;;  %v4933_v58 = vld [vmem:[%s5694_s5 + $0x108] sm:$0xff]   ;;  %v3525_v7 = vld [vmem:[#allocation4 + $0x8] ss:$16 sm:$0xc] }
 0x3df   : > { %v2943_v1 = vld [vmem:[#allocation4 + $0x1] ss:$16 sm:$0xc] }
 0x3e0   : > { %v3257_v49 = vadd.f32 %v3248_v18, %v3232_v17  ;;  %v3023_v63 = vmul.f32 0.5, %v3021_v19 }
 0x3e1   : > { %v4486_v28 = vpop.f32.mrb[20].mxu1 }
 0x3e2   : > { %2916 = vst [vmem:[#allocation4 + $0xb0] sm:$0xff] %v4486_v28  ;;  %v2815_v29 = vpop.f32.mrb[21].mxu1  ;;  %v2998_v13 = vld [vmem:[#allocation4 + $0x82] ss:$16 sm:$0x3]  ;;  %v3259_v33 = vmul.f32 0.5, %v3257_v49 }
 0x3e3   : > { %2914 = vst [vmem:[#allocation4 + $0xa0] sm:$0xff] %v2815_v29  ;;  %v4487_v30 = vpop.f32.mrb[22].mxu1  ;;  %v3014_v15 = vld [vmem:[#allocation4 + $0x83] ss:$16 sm:$0x3] }
 0x3e4   : > { %2917 = vst [vmem:[#allocation4 + $0xb8] sm:$0xff] %v4487_v30  ;;  %v2818_v40 = vpop.f32.mrb[23].mxu1  ;;  %v3234_v45 = vld [vmem:[#allocation4 + $0x84] ss:$16 sm:$0x3] }
 0x3e5   : > { %2915 = vst [vmem:[#allocation4 + $0xa8] sm:$0xff] %v2818_v40  ;;  %v3250_v21 = vld [vmem:[#allocation4 + $0x85] ss:$16 sm:$0x3] }
 0x3e6   : > { %v2934_v62 = vld [vmem:[#allocation4 + $0x80] ss:$16 sm:$0x3]  ;;  %v3548_v17 = vld [vmem:[#allocation4 + $0x89] ss:$16 sm:$0x3] }
 0x3e9   : > { %v4490_v6 = vpop.f32.mrb[24].mxu1 }
 0x3ea   : > { %2920 = vst [vmem:[#allocation4 + $0xd0] sm:$0xff] %v4490_v6  ;;  %v2831_v3 = vpop.f32.mrb[25].mxu1  ;;  %v2999_v9 = vld [vmem:[#allocation4 + $0x82] ss:$16 sm:$0xc] }
 0x3eb   : > { %2918 = vst [vmem:[#allocation4 + $0xc0] sm:$0xff] %v2831_v3  ;;  %v4491_v34 = vpop.f32.mrb[26].mxu1  ;;  %v3015_v16 = vld [vmem:[#allocation4 + $0x83] ss:$16 sm:$0xc]  ;;  %v3000_v25 = vor.u32 %v2999_v9, %v2998_v13 }
 0x3ec   : > { %2921 = vst [vmem:[#allocation4 + $0xd8] sm:$0xff] %v4491_v34  ;;  %v2834_v38 = vpop.f32.mrb[27].mxu1  ;;  %v3235_v20 = vld [vmem:[#allocation4 + $0x84] ss:$16 sm:$0xc]  ;;  %v3016_v50 = vor.u32 %v3015_v16, %v3014_v15 }
 0x3ed   : > { %2919 = vst [vmem:[#allocation4 + $0xc8] sm:$0xff] %v2834_v38  ;;  %v3251_v23 = vld [vmem:[#allocation4 + $0x85] ss:$16 sm:$0xc]  ;;  %v3236_v61 = vor.u32 %v3235_v20, %v3234_v45  ;;  %v5524_v3 = vld [vmem:[%s5693_s4] ss:$0 sm:$0xff] }
 0x3ee   : > { %v3252_v22 = vor.u32 %v3251_v23, %v3250_v21  ;;  %v3025_v39 = vadd.f32 %v5524_v3, %v3023_v63  ;;  %v3261_v42 = vadd.f32 %v5524_v3, %v3259_v33  ;;  %v2935_v0 = vld [vmem:[#allocation4 + $0x80] ss:$16 sm:$0xc]  ;;  %v2951_v5 = vld [vmem:[#allocation4 + $0x81] ss:$16 sm:$0xc] }
 0x3ef   : > { %v2926_v9 = vld [vmem:[#allocation4] ss:$16 sm:$0x3]  ;;  %v3532_v13 = vld [vmem:[#allocation4 + $0x88] ss:$16 sm:$0x3] }
 0x3f0   : > { %v3027_v47 = vmax.f32 %v3025_v39, 0.0  ;;  %v3263_v52 = vmax.f32 %v3261_v42, 0.0  ;;  %v3533_v15 = vld [vmem:[#allocation4 + $0x88] ss:$16 sm:$0xc]  ;;  %v2928_v49 = vor.u32 %v2927_v59, %v2926_v9 }
 0x3f1   : > { %v4494_v60 = vpop.f32.mrb[28].mxu1  ;;  %v3541_v16 = vld [vmem:[#allocation4 + $0x9] ss:$16 sm:$0xc]  ;;  %v3534_v63 = vor.u32 %v3533_v15, %v3532_v13 }
 0x3f2   : > { %2924 = vst [vmem:[#allocation4 + $0xf0] sm:$0xff] %v4494_v60  ;;  %v2847_v2 = vpop.f32.mrb[29].mxu1  ;;  %v3001_v24 = vld [vmem:[#allocation4 + $0x82] ss:$16 sm:$0x30]  ;;  %v4934_v60 = vld [vmem:[%s5694_s5 + $0x10] sm:$0xff]  }
 0x3f3   : > { %2922 = vst [vmem:[#allocation4 + $0xe0] sm:$0xff] %v2847_v2  ;;  %v4495_v8 = vpop.f32.mrb[30].mxu1  ;;  %v3017_v26 = vld [vmem:[#allocation4 + $0x83] ss:$16 sm:$0x30]  ;;  %v3002_v14 = vor.u32 %v3001_v24, %v3000_v25  ;;  %v2936_v24 = vor.u32 %v2935_v0, %v2934_v62  ;;  %v4942_v9 = vld [vmem:[%s5694_s5 + $0x30] sm:$0xff]  }
 0x3f4   : > { %2925 = vst [vmem:[#allocation4 + $0xf8] sm:$0xff] %v4495_v8  ;;  %v2850_v10 = vpop.f32.mrb[31].mxu1  ;;  %v3237_v11 = vld [vmem:[#allocation4 + $0x84] ss:$16 sm:$0x30]  ;;  %v3018_v44 = vor.u32 %v3017_v26, %v3016_v50  ;;  %v4935_v8 = vld [vmem:[%s5694_s5 + $0x110] sm:$0xff]  }
 0x3f5   : > { %2923 = vst [vmem:[#allocation4 + $0xe8] sm:$0xff] %v2850_v10  ;;  %v3253_v36 = vld [vmem:[#allocation4 + $0x85] ss:$16 sm:$0x30]  ;;  %v3238_v28 = vor.u32 %v3237_v11, %v3236_v61  ;;  %v4943_v13 = vld [vmem:[%s5694_s5 + $0x130] sm:$0xff]  }
 0x3f6   : > { %v3254_v29 = vor.u32 %v3253_v36, %v3252_v22  ;;  %v2950_v2 = vld [vmem:[#allocation4 + $0x81] ss:$16 sm:$0x3]  ;;  %v2929_v10 = vld [vmem:[#allocation4] ss:$16 sm:$0x30] }
 0x3f7   : > { %v3549_v18 = vld [vmem:[#allocation4 + $0x89] ss:$16 sm:$0xc]  ;;  %v2937_v19 = vld [vmem:[#allocation4 + $0x80] ss:$16 sm:$0x30]  ;;  %v2952_v26 = vor.u32 %v2951_v5, %v2950_v2 }
 0x3f8   : > { %v2942_v45 = vld [vmem:[#allocation4 + $0x1] ss:$16 sm:$0x3]  ;;  %v3524_v23 = vld [vmem:[#allocation4 + $0x8] ss:$16 sm:$0x3] }
 0x3f9   : > { %v2945_v20 = vld [vmem:[#allocation4 + $0x1] ss:$16 sm:$0x30]  ;;  %v3527_v25 = vld [vmem:[#allocation4 + $0x8] ss:$16 sm:$0x30] }
 0x3fa   : > { %v3003_v12 = vld [vmem:[#allocation4 + $0x82] ss:$16 sm:$0xc0]  ;;  %v3019_v27 = vld [vmem:[#allocation4 + $0x83] ss:$16 sm:$0xc0] }
 0x3fb   : > { %v3004_v30 = vor.u32 %v3003_v12, %v3002_v14  ;;  %v3020_v40 = vor.u32 %v3019_v27, %v3018_v44  ;;  %v3239_v6 = vld [vmem:[#allocation4 + $0x84] ss:$16 sm:$0xc0]  ;;  %v3255_v35 = vld [vmem:[#allocation4 + $0x85] ss:$16 sm:$0xc0]  ;;  %v3550_v12 = vor.u32 %v3549_v18, %v3548_v17 }
 0x3fc   : > { %v3240_v31 = vor.u32 %v3239_v6, %v3238_v28  ;;  %v3256_v32 = vor.u32 %v3255_v35, %v3254_v29  ;;  %v2953_v21 = vld [vmem:[#allocation4 + $0x81] ss:$16 sm:$0x30]  ;;  %v3535_v50 = vld [vmem:[#allocation4 + $0x88] ss:$16 sm:$0x30]  ;;  %v2938_v28 = vor.u32 %v2937_v19, %v2936_v24  ;;  %v2944_v29 = vor.u32 %v2943_v1, %v2942_v45 }
 0x3fd   : > { %v3022_v34 = vadd.f32 %v3020_v40, %v3004_v30  ;;  %v3540_v11 = vld [vmem:[#allocation4 + $0x9] ss:$16 sm:$0x3]  ;;  %v4936_v22 = vld [vmem:[%s5694_s5 + $0x18] sm:$0xff]   ;;  %v2954_v30 = vor.u32 %v2953_v21, %v2952_v26  ;;  %v3526_v40 = vor.u32 %v3525_v7, %v3524_v23  ;;  %v4940_v0 = vld [vmem:[%s5694_s5 + $0x28] sm:$0xff]  }
 0x3fe   : > { %v3258_v37 = vadd.f32 %v3256_v32, %v3240_v31  ;;  %v3543_v36 = vld [vmem:[#allocation4 + $0x9] ss:$16 sm:$0x30]  ;;  %v2939_v14 = vld [vmem:[#allocation4 + $0x80] ss:$16 sm:$0xc0]  ;;  %v2930_v31 = vor.u32 %v2929_v10, %v2928_v49 }
 0x3ff   : > { %v3024_v38 = vmul.f32 0.5, %v3022_v34  ;;  %v3551_v61 = vld [vmem:[#allocation4 + $0x89] ss:$16 sm:$0x30]  ;;  %v4937_v27 = vld [vmem:[%s5694_s5 + $0x118] sm:$0xff]   ;;  %v3536_v34 = vor.u32 %v3535_v50, %v3534_v63  ;;  %v2940_v39 = vor.u32 %v2939_v14, %v2938_v28  ;;  %v4941_v2 = vld [vmem:[%s5694_s5 + $0x128] sm:$0xff]  }
 0x400   : > { %v3260_v41 = vmul.f32 0.5, %v3258_v37  ;;  %v2955_v44 = vld [vmem:[#allocation4 + $0x81] ss:$16 sm:$0xc0]  ;;  %v3542_v37 = vor.u32 %v3541_v16, %v3540_v11  ;;  %v4946_v26 = vld [vmem:[%s5694_s5 + $0xc0] sm:$0xff]  }
 0x401   : > { %v3026_v43 = vadd.f32 %v5524_v3, %v3024_v38  ;;  %v3537_v6 = vld [vmem:[#allocation4 + $0x88] ss:$16 sm:$0xc0]  ;;  %v3553_v35 = vld [vmem:[#allocation4 + $0x89] ss:$16 sm:$0xc0]  ;;  %v3552_v38 = vor.u32 %v3551_v61, %v3550_v12  ;;  %v2956_v42 = vor.u32 %v2955_v44, %v2954_v30 }
 0x402   : > { %v3262_v46 = vadd.f32 %v5524_v3, %v3260_v41  ;;  %v2931_v32 = vld [vmem:[#allocation4] ss:$16 sm:$0xc0]  ;;  %v2947_v33 = vld [vmem:[#allocation4 + $0x1] ss:$16 sm:$0xc0]  ;;  %v2946_v41 = vor.u32 %v2945_v20, %v2944_v29 }
 0x403   : > { %v3028_v48 = vmax.f32 %v3026_v43, 0.0  ;;  %v3529_v43 = vld [vmem:[#allocation4 + $0x8] ss:$16 sm:$0xc0]  ;;  %v2958_v59 = vadd.f32 %v2956_v42, %v2940_v39  ;;  %v4944_v18 = vld [vmem:[%s5694_s5 + $0x38] sm:$0xff]   ;;  %v4947_v11 = vld [vmem:[%s5694_s5 + $0xc8] sm:$0xff]  }
 0x404   : > { %v3264_v53 = vmax.f32 %v3262_v46, 0.0  ;;  %v3545_v46 = vld [vmem:[#allocation4 + $0x9] ss:$16 sm:$0xc0]  ;;  %v4945_v45 = vld [vmem:[%s5694_s5 + $0x138] sm:$0xff]  }
 0x405   : > { %v3029_v54 = vpack.c.bf16 %v3028_v48, %v3027_v47  ;;  %v3528_v47 = vor.u32 %v3527_v25, %v3526_v40  ;;  %v3538_v48 = vor.u32 %v3537_v6, %v3536_v34  ;;  %v2960_v5 = vmul.f32 0.5, %v2958_v59  ;;  %v3376_v61 = vld [vmem:[#allocation4 + $0x6] ss:$16 sm:$0xc]  ;;  %v4952_v59 = vld [vmem:[%s5694_s5 + $0xf0] sm:$0xff]  }
 0x406   : > { %v3265_v56 = vpack.c.bf16 %v3264_v53, %v3263_v52  ;;  %v3554_v52 = vor.u32 %v3553_v35, %v3552_v38  ;;  %v2932_v53 = vor.u32 %v2931_v32, %v2930_v31  ;;  %v3392_v49 = vld [vmem:[#allocation4 + $0x7] ss:$16 sm:$0xc]  ;;  %v3383_v44 = vld [vmem:[#allocation4 + $0x86] ss:$16 sm:$0x3] }
 0x407   : > { %4513 = vmatmul.mubr.bf16.vlgmr.msra.gmra.mrb[128].mxu0 %v3029_v54  ;;  %v2948_v54 = vor.u32 %v2947_v33, %v2946_v41  ;;  %v2969_v15 = vadd.f32 %v5524_v3, %v2960_v5  ;;  %v3400_v14 = vld [vmem:[#allocation4 + $0x87] ss:$16 sm:$0xc]  ;;  %v3375_v12 = vld [vmem:[#allocation4 + $0x6] ss:$16 sm:$0x3] }
 0x408   : > { %4517 = vmatpush3.bf16.msra.mxu0 %v4930_v51  ;;  %4553 = vmatmul.mubr.bf16.vlgmr.msra.gmra.mrb[32].mxu1 %v3265_v56  ;;  %v3544_v51 = vor.u32 %v3543_v36, %v3542_v37  ;;  %v3530_v56 = vor.u32 %v3529_v43, %v3528_v47  ;;  %v4948_v36 = vld [vmem:[%s5694_s5 + $0xd0] sm:$0xff]   ;;  %v3399_v63 = vld [vmem:[#allocation4 + $0x87] ss:$16 sm:$0x3]  ;;  %v3377_v34 = vor.u32 %v3376_v61, %v3375_v12 }
 0x409   : > { %4577 = vmatpush3.bf16.msra.mxu1 %v4931_v55  ;;  %4518 = vmatprep.subr.bf16.mxu0 %v5478_v4  ;;  %v4938_v55 = vld [vmem:[%s5694_s5 + $0x20] sm:$0xff]   ;;  %v2957_v62 = vadd.f32 %v2948_v54, %v2932_v53  ;;  %v2971_v20 = vmax.f32 %v2969_v15, 0.0  ;;  %v3391_v28 = vld [vmem:[#allocation4 + $0x7] ss:$16 sm:$0x3]  ;;  %v3401_v35 = vor.u32 %v3400_v14, %v3399_v63 }
 0x40a   : > { %4578 = vmatprep.subr.bf16.mxu1 %v5478_v4  ;;  %4532 = vmatprep.mubr.msk.bf16.mxu0 %vm5021_vm1, %v5478_v4  ;;  %v3402_v29 = vld [vmem:[#allocation4 + $0x87] ss:$16 sm:$0x30]  ;;  %v3378_v30 = vld [vmem:[#allocation4 + $0x6] ss:$16 sm:$0x30]  ;;  %v3393_v38 = vor.u32 %v3392_v49, %v3391_v28 }
 0x40b   : > { %4592 = vmatprep.mubr.msk.bf16.mxu1 %vm5021_vm1, %v5478_v4  ;;  %v3394_v6 = vld [vmem:[#allocation4 + $0x7] ss:$16 sm:$0x30]  ;;  %v3388_v31 = vld [vmem:[#allocation4 + $0x86] ss:$16 sm:$0xc0]  ;;  %v3403_v39 = vor.u32 %v3402_v29, %v3401_v35  ;;  %v3379_v43 = vor.u32 %v3378_v30, %v3377_v34 }
 0x40c   : > { %4519 = vmatpush3.bf16.msra.mxu0 %v4932_v57  ;;  %v3546_v57 = vor.u32 %v3545_v46, %v3544_v51  ;;  %v3404_v32 = vld [vmem:[#allocation4 + $0x87] ss:$16 sm:$0xc0]  ;;  %v3380_v41 = vld [vmem:[#allocation4 + $0x6] ss:$16 sm:$0xc0]  ;;  %v3395_v47 = vor.u32 %v3394_v6, %v3393_v38 }
 0x40d   : > { %4579 = vmatpush3.bf16.msra.mxu1 %v4933_v58  ;;  %4520 = vmatprep.subr.bf16.mxu0 %v5478_v4  ;;  %v4939_v58 = vld [vmem:[%s5694_s5 + $0x120] sm:$0xff]   ;;  %v4949_v33 = vld [vmem:[%s5694_s5 + $0xd8] sm:$0xff]   ;;  %v3381_v51 = vor.u32 %v3380_v41, %v3379_v43 }
 0x40e   : > { %4580 = vmatprep.subr.bf16.mxu1 %v5478_v4  ;;  %v3555_v1 = vadd.f32 %v3546_v57, %v3530_v56  ;;  %v3396_v42 = vld [vmem:[#allocation4 + $0x7] ss:$16 sm:$0xc0]  ;;  %v4950_v53 = vld [vmem:[%s5694_s5 + $0xe0] sm:$0xff]  }
 0x40f   : > { %v4951_v56 = vld [vmem:[%s5694_s5 + $0xe8] sm:$0xff]  }
 0x410   : > { %4521 = vmatpush3.bf16.msra.mxu0 %v4934_v60  ;;  %v3556_v60 = vadd.f32 %v3554_v52, %v3538_v48  ;;  %v3557_v10 = vmul.f32 0.5, %v3555_v1  ;;  %v3405_v48 = vor.u32 %v3404_v32, %v3403_v39  ;;  %v3397_v52 = vor.u32 %v3396_v42, %v3395_v47 }
 0x411   : > { %4581 = vmatpush3.bf16.msra.mxu1 %v4935_v8  ;;  %4522 = vmatprep.subr.bf16.mxu0 %v5478_v4  ;;  %v2959_v8 = vmul.f32 0.5, %v2957_v62 }
 0x412   : > { %4582 = vmatprep.subr.bf16.mxu1 %v5478_v4  ;;  %v3558_v7 = vmul.f32 0.5, %v3556_v60  ;;  %v3559_v19 = vadd.f32 %v5524_v3, %v3557_v10 }
 0x413   : > { %v2968_v17 = vadd.f32 %v5524_v3, %v2959_v8 }
 0x414   : > { %4523 = vmatpush3.bf16.msra.mxu0 %v4936_v22  ;;  %v3560_v16 = vadd.f32 %v5524_v3, %v3558_v7  ;;  %v3561_v24 = vmax.f32 %v3559_v19, 0.0  ;;  %v3384_v22 = vld [vmem:[#allocation4 + $0x86] ss:$16 sm:$0xc] }
 0x415   : > { %4583 = vmatpush3.bf16.msra.mxu1 %v4937_v27  ;;  %4524 = vmatprep.subr.bf16.mxu0 %v5478_v4  ;;  %v2970_v23 = vmax.f32 %v2968_v17, 0.0  ;;  %v3386_v27 = vld [vmem:[#allocation4 + $0x86] ss:$16 sm:$0x30]  ;;  %v3385_v40 = vor.u32 %v3384_v22, %v3383_v44  ;;  %v4083_v22 = vld [vmem:[%s5695_s6] ss:$0 sm:$0xff] }
 0x416   : > { %4584 = vmatprep.subr.bf16.mxu1 %v5478_v4  ;;  %v3562_v21 = vmax.f32 %v3560_v16, 0.0 }
 0x417   : > { %v2972_v25 = vpack.c.bf16 %v2971_v20, %v2970_v23  ;;  %v3387_v37 = vor.u32 %v3386_v27, %v3385_v40 }
 0x418   : > { %4525 = vmatpush3.bf16.msra.mxu0 %v4938_v55  ;;  %v3563_v50 = vpack.c.bf16 %v3562_v21, %v3561_v24  ;;  %v3406_v55 = vadd.f32 %v3397_v52, %v3381_v51 }
 0x419   : > { %4585 = vmatpush3.bf16.msra.mxu1 %v4939_v58  ;;  %4526 = vmatprep.subr.bf16.mxu0 %v5478_v4  ;;  %v3389_v46 = vor.u32 %v3388_v31, %v3387_v37 }
 0x41a   : > { %4586 = vmatprep.subr.bf16.mxu1 %v5478_v4  ;;  %v3408_v58 = vmul.f32 0.5, %v3406_v55 }
 0x41b   : > { %v3407_v54 = vadd.f32 %v3405_v48, %v3389_v46 }
 0x41c   : > { %4527 = vmatpush3.bf16.msra.mxu0 %v4940_v0  ;;  %v3410_v62 = vadd.f32 %v5524_v3, %v3408_v58  ;;  %v4953_v0 = vld [vmem:[%s5694_s5 + $0xf8] sm:$0xff]  }
 0x41d   : > { %4587 = vmatpush3.bf16.msra.mxu1 %v4941_v2  ;;  %4528 = vmatprep.subr.bf16.mxu0 %v5478_v4  ;;  %v3409_v57 = vmul.f32 0.5, %v3407_v54 }
 0x41e   : > { %4588 = vmatprep.subr.bf16.mxu1 %v5478_v4  ;;  %v3412_v2 = vmax.f32 %v3410_v62, 0.0 }
 0x41f   : > { %v3411_v60 = vadd.f32 %v5524_v3, %v3409_v57 }
 0x420   : > { %4529 = vmatpush3.bf16.msra.mxu0 %v4942_v9 }
 0x421   : > { %4589 = vmatpush3.bf16.msra.mxu1 %v4943_v13  ;;  %4530 = vmatprep.subr.bf16.mxu0 %v5478_v4  ;;  %v3413_v1 = vmax.f32 %v3411_v60, 0.0 }
 0x422   : > { %4590 = vmatprep.subr.bf16.mxu1 %v5478_v4 }
 0x423   : > { %v3414_v5 = vpack.c.bf16 %v3413_v1, %v3412_v2 }
 0x424   : > { %4531 = vmatpush3.bf16.msra.mxu0 %v4944_v18 }
 0x425   : > { %4591 = vmatpush3.bf16.msra.mxu1 %v4945_v45  ;;  %4556 = vmatprep.subr.bf16.mxu0 %v5478_v4 }
 0x427   : > { %4533 = vmatmul.mubr.bf16.vlgmr.msra.gmra.mrb[132].mxu0 %v2972_v25 }
 0x428   : > { %4593 = vmatmul.mubr.bf16.vlgmr.msra.gmra.mrb[36].mxu1 %v3563_v50  ;;  %4557 = vmatpush3.bf16.msra.mxu0 %v4946_v26 }
 0x429   : > { %4558 = vmatprep.subr.bf16.mxu0 %v5478_v4  ;;  %4572 = vmatprep.mubr.msk.bf16.mxu0 %vm5021_vm1, %v5478_v4 }
 0x42c   : > { %4559 = vmatpush3.bf16.msra.mxu0 %v4947_v11 }
 0x42d   : > { %4560 = vmatprep.subr.bf16.mxu0 %v5478_v4 }
 0x430   : > { %4561 = vmatpush3.bf16.msra.mxu0 %v4948_v36 }
 0x431   : > { %4562 = vmatprep.subr.bf16.mxu0 %v5478_v4 }
 0x434   : > { %4563 = vmatpush3.bf16.msra.mxu0 %v4949_v33 }
 0x435   : > { %4564 = vmatprep.subr.bf16.mxu0 %v5478_v4 }
 0x438   : > { %4565 = vmatpush3.bf16.msra.mxu0 %v4950_v53 }
 0x439   : > { %4566 = vmatprep.subr.bf16.mxu0 %v5478_v4 }
 0x43c   : > { %4567 = vmatpush3.bf16.msra.mxu0 %v4951_v56 }
 0x43d   : > { %4568 = vmatprep.subr.bf16.mxu0 %v5478_v4 }
 0x440   : > { %4569 = vmatpush3.bf16.msra.mxu0 %v4952_v59 }
 0x441   : > { %4570 = vmatprep.subr.bf16.mxu0 %v5478_v4 }
 0x444   : > { %4571 = vmatpush3.bf16.msra.mxu0 %v4953_v0 }
 0x447   : > { %4573 = vmatmul.mubr.bf16.vlgmr.msra.gmra.mrb[136].mxu0 %v3414_v5 }
 0x4da   : > { %v3129_v7 = vpop.f32.mrb[128].mxu0 }
 0x4db   : > { %v3365_v8 = vpop.f32.mrb[32].mxu1  ;;  %v4514_v9 = vpop.f32.mrb[129].mxu0 }
 0x4dc   : > { %v4554_v10 = vpop.f32.mrb[33].mxu1  ;;  %v3132_v13 = vpop.f32.mrb[130].mxu0 }
 0x4dd   : > { %v3368_v15 = vpop.f32.mrb[34].mxu1  ;;  %v4515_v3 = vpop.f32.mrb[131].mxu0 }
 0x4de   : > { %v4555_v16 = vpop.f32.mrb[35].mxu1 }
 0x4fa   : > { %v3218_v17 = vpop.f32.mrb[132].mxu0 }
 0x4fb   : > { %v3219_v18 = vadd.f32 %v3218_v17, %v3129_v7  ;;  %v3663_v19 = vpop.f32.mrb[36].mxu1  ;;  %v4534_v45 = vpop.f32.mrb[133].mxu0 }
 0x4fc   : > { %v4594_v20 = vpop.f32.mrb[37].mxu1  ;;  %v3221_v4 = vpop.f32.mrb[134].mxu0 }
 0x4fd   : > { %v3222_v21 = vadd.f32 %v3221_v4, %v3132_v13  ;;  %v3666_v23 = vpop.f32.mrb[38].mxu1  ;;  %v4535_v24 = vpop.f32.mrb[135].mxu0  ;;  %v3372_v26 = vadd.f32 %v3365_v8, %v3219_v18 }
 0x4fe   : > { %v4595_v25 = vpop.f32.mrb[39].mxu1 }
 0x4ff   : > { %v3373_v50 = vadd.f32 %v3368_v15, %v3222_v21 }
 0x51a   : > { %v3514_v11 = vpop.f32.mrb[136].mxu0 }
 0x51b   : > { %v3521_v36 = vadd.f32 %v3514_v11, %v3372_v26  ;;  %v4574_v61 = vpop.f32.mrb[137].mxu0 }
 0x51c   : > { %v3517_v49 = vpop.f32.mrb[138].mxu0 }
 0x51d   : > { %v3670_v14 = vadd.f32 %v3663_v19, %v3521_v36  ;;  %v3522_v44 = vadd.f32 %v3517_v49, %v3373_v50  ;;  %v4575_v63 = vpop.f32.mrb[139].mxu0 }
 0x51f   : > { %v3679_v12 = vadd.f32 %v4083_v22, %v3670_v14  ;;  %v3671_v27 = vadd.f32 %v3666_v23, %v3522_v44 }
 0x521   : > { %3681 = vst [vmem:[%s274_s9] sm:$0xff] %v3679_v12  ;;  %v3680_v28 = vadd.f32 %v4083_v22, %v3671_v27 }
 0x523   : > { %3682 = vst [vmem:[%s274_s9 + $0x8] sm:$0xff] %v3680_v28 }
 0x524   : > { %4968 = shalt.err (!%p4965_p3)
}
 0x525   : > { %s4969_s21 = scalar_lea.hbm %s5646_s16, 256  ;;  %s4973_s8 = scalar_lea.hbm %s5696_s7, 512 }
 0x526   : > { %p4970_p4 = scmp.ne.s32.totalorder %s5646_s16, %s4969_s21  ;;  %p4974_p9 = scmp.lt.u32.totalorder %s5646_s16, %s5696_s7 }
 0x527   : > { %p4975_p10 = scmp.lt.u32.totalorder %s4973_s8, %s4969_s21  ;;  %p4977_p12 = scmp.lt.u32.totalorder %s4969_s21, %s5646_s16 }
 0x528   : > { %p4971_p7 = pnand %p4970_p4, %p5103_p5 }
 0x529   : > { %p4976_p11 = por %p4975_p10, %p4974_p9 }
 0x52a   : > { %p4972_p8 = pneg %p4971_p7 }
 0x52b   : > { %p4978_p13 = por %p4977_p12, %p4976_p11 }
 0x52d   : > { %p4979_p0 = pnand %p4978_p13, %p4972_p8 }
 0x52f   : > { %4982 = shalt.err (!%p4979_p0)
}
 0x530   : > { %s5023_s15 = smov 128   ;;  %s5024_s23 = smov 8  }
 0x531   : > { %4724 = dma.vmem_to_hbm [thread:$0]  (%p5103_p5), %s5641_s13, 256, %s5646_s16, %s5648_s17, %s5023_s15, %s5023_s15, %s5024_s23  }
 0x532 PF: > { %p4730_p1 = scmp.ge.s32.totalorder %s5017_s27, 2  ;;  %s3712_s18 = sand.u32 1, %s5005_s24  }
 0x533   : > { %s3713_s28 = scalar_lea.sflag [#allocation6], %s3712_s18 }
 0x534   : > { %p4727_p2 = pnand %p4730_p1, %p5107_p6 }
 0x536   : > { %5000 = dma.done.wait (!%p4727_p2), %s3713_s28, 256  }
 0x537   : > { %5002 = vsyncadd (!%p4727_p2), %s3713_s28, 4294967040  ;;  %p17_p3 = scmp.ge.s32.totalorder %s5090_s30, 4   ;;  %s5699_s24 = smov %s5009_s25 }
 0x538   : > { %s5700_s25 = smov %s5013_s26  ;;  %s5701_s26 = smov %s5101_s10 }
 0x539   : > { %s5702_s27 = smov %s5090_s30  ;;  %19 = sbr.rel (!%p17_p3) target bundleno = 3 (0x3), region = 173 }
 0x540   :  { %3718 = vsyncpa [#allocation6], 1 }
 0x541   :  { %3720 = vsyncpa [#allocation6 + $0x1], 1 }

</bundles_post_ra>
